<compile_context>
chip_gen: v5e
topology: v5e:2x2
jax: 0.10.0
libtpu: 0.0.40
codegen_flags: <defaults>
</compile_context>

<pallas_src>
import functools
import math

import jax
import jax.numpy as jnp
from jax import lax
from jax.experimental import pallas as pl
from jax.experimental.pallas import tpu as pltpu


_VMEM_LIMIT = 32 * 1024 * 1024  # safe on v5e/v6e (128 MiB) and v7x (64 MiB phys)


# ------------------------------ tiling helpers ------------------------------

def _round_up(x, m):
    return ((x + m - 1) // m) * m


def _pick_tile(dim, pref, align):
    """Largest t <= pref with t % align == 0 and dim % t == 0.

    Falls back to the full dimension (block == array extent is always legal)
    only when no aligned divisor exists; after L-padding this only happens for
    small dims that fit in one block anyway.
    """
    if dim <= pref:
        return dim
    t = (min(pref, dim) // align) * align
    while t >= align:
        if dim % t == 0:
            return t
        t -= align
    return dim


# --------------------------- LayerNorm (standalone) -------------------------

def _ln_kernel(x_ref, g_ref, b_ref, o_ref, *, eps):
    x = x_ref[...].astype(jnp.float32)
    mean = jnp.mean(x, axis=-1, keepdims=True)
    xc = x - mean
    var = jnp.mean(xc * xc, axis=-1, keepdims=True)
    inv = lax.rsqrt(var + eps)
    o_ref[...] = (xc * inv * g_ref[...] + b_ref[...]).astype(o_ref.dtype)


def layer_norm(x, gamma, beta, *, eps=1e-5, tm=256):
    M, D = x.shape
    tm = _pick_tile(M, tm, 8)
    g = gamma.reshape(1, D).astype(jnp.float32)
    b = beta.reshape(1, D).astype(jnp.float32)
    return pl.pallas_call(
        functools.partial(_ln_kernel, eps=eps),
        out_shape=jax.ShapeDtypeStruct((M, D), x.dtype),
        grid=(M // tm,),
        in_specs=[pl.BlockSpec((tm, D), lambda i: (i, 0)),
                  pl.BlockSpec((1, D), lambda i: (0, 0)),
                  pl.BlockSpec((1, D), lambda i: (0, 0))],
        out_specs=pl.BlockSpec((tm, D), lambda i: (i, 0)),
        compiler_params=pltpu.CompilerParams(
            dimension_semantics=("parallel",),
            vmem_limit_bytes=_VMEM_LIMIT),
    )(x, g, b)


# ----------------------- fused LayerNorm + Linear kernel ---------------------

def _ln_linear_kernel(x_ref, g_ref, b_ref, w_ref, bias_ref, o_ref, h_ref,
                      *, eps, activation):
    # LN of the (tm, Din) row block is computed once per M tile (j == 0) into
    # a bf16 VMEM scratch and reused for every N tile.
    @pl.when(pl.program_id(1) == 0)
    def _():
        x = x_ref[...].astype(jnp.float32)
        mean = jnp.mean(x, axis=-1, keepdims=True)
        xc = x - mean
        var = jnp.mean(xc * xc, axis=-1, keepdims=True)
        inv = lax.rsqrt(var + eps)
        h_ref[...] = (xc * inv * g_ref[...] + b_ref[...]).astype(h_ref.dtype)

    y = jnp.dot(h_ref[...], w_ref[...], preferred_element_type=jnp.float32)
    y = y + bias_ref[...]
    if activation == "quick_gelu":              # CLIP uses QuickGELU
        y = y * jax.nn.sigmoid(1.702 * y)
    o_ref[...] = y.astype(o_ref.dtype)


def ln_linear(x, gamma, beta, w, bias, *, activation=None, eps=1e-5,
              out_dtype=jnp.bfloat16, tm=256, tn=512):
    M, Din = x.shape
    Dout = w.shape[1]
    tm = _pick_tile(M, tm, 8)
    tn = _pick_tile(Dout, tn, 128)
    g = gamma.reshape(1, Din).astype(jnp.float32)
    b = beta.reshape(1, Din).astype(jnp.float32)
    bias2 = bias.reshape(1, Dout).astype(jnp.float32)
    return pl.pallas_call(
        functools.partial(_ln_linear_kernel, eps=eps, activation=activation),
        out_shape=jax.ShapeDtypeStruct((M, Dout), out_dtype),
        grid=(M // tm, Dout // tn),
        in_specs=[pl.BlockSpec((tm, Din), lambda i, j: (i, 0)),
                  pl.BlockSpec((1, Din), lambda i, j: (0, 0)),
                  pl.BlockSpec((1, Din), lambda i, j: (0, 0)),
                  pl.BlockSpec((Din, tn), lambda i, j: (0, j)),
                  pl.BlockSpec((1, tn), lambda i, j: (0, j))],
        out_specs=pl.BlockSpec((tm, tn), lambda i, j: (i, j)),
        scratch_shapes=[pltpu.VMEM((tm, Din), jnp.bfloat16)],
        compiler_params=pltpu.CompilerParams(
            dimension_semantics=("parallel", "arbitrary"),
            vmem_limit_bytes=_VMEM_LIMIT),
    )(x, g, b, w, bias2)


# --------------- tiled Linear (+bias, +activation, +residual) ---------------

def _linear_kernel(*refs, activation, has_residual):
    if has_residual:
        x_ref, w_ref, bias_ref, res_ref, o_ref, acc_ref = refs
    else:
        x_ref, w_ref, bias_ref, o_ref, acc_ref = refs
        res_ref = None
    k = pl.program_id(2)

    @pl.when(k == 0)
    def _():
        acc_ref[...] = jnp.zeros_like(acc_ref)

    acc_ref[...] += jnp.dot(x_ref[...].astype(jnp.bfloat16), w_ref[...],
                            preferred_element_type=jnp.float32)

    @pl.when(k == pl.num_programs(2) - 1)
    def _():
        y = acc_ref[...] + bias_ref[...]
        if activation == "quick_gelu":
            y = y * jax.nn.sigmoid(1.702 * y)
        if res_ref is not None:
            y = y + res_ref[...].astype(jnp.float32)
        o_ref[...] = y.astype(o_ref.dtype)


def linear(x, w, bias=None, residual=None, *, activation=None, out_dtype=None,
           tm=256, tn=512, tk=512):
    M, K = x.shape
    N = w.shape[1]
    tm = _pick_tile(M, tm, 8)
    tn = _pick_tile(N, tn, 128)
    tk = _pick_tile(K, tk, 128)
    if out_dtype is None:
        out_dtype = residual.dtype if residual is not None else x.dtype
    if bias is None:
        bias = jnp.zeros((N,), jnp.float32)
    bias2 = bias.reshape(1, N).astype(jnp.float32)

    in_specs = [pl.BlockSpec((tm, tk), lambda i, j, k: (i, k)),
                pl.BlockSpec((tk, tn), lambda i, j, k: (k, j)),
                pl.BlockSpec((1, tn), lambda i, j, k: (0, j))]
    args = [x, w, bias2]
    if residual is not None:
        in_specs.append(pl.BlockSpec((tm, tn), lambda i, j, k: (i, j)))
        args.append(residual)

    return pl.pallas_call(
        functools.partial(_linear_kernel, activation=activation,
                          has_residual=residual is not None),
        out_shape=jax.ShapeDtypeStruct((M, N), out_dtype),
        grid=(M // tm, N // tn, K // tk),
        in_specs=in_specs,
        out_specs=pl.BlockSpec((tm, tn), lambda i, j, k: (i, j)),
        scratch_shapes=[pltpu.VMEM((tm, tn), jnp.float32)],
        compiler_params=pltpu.CompilerParams(
            dimension_semantics=("parallel", "parallel", "arbitrary"),
            vmem_limit_bytes=_VMEM_LIMIT),
    )(*args)


# ----------------------- attention (grouped heads per step) -----------------

def _attn_heads(q_all, k_all, v_all, mask, n_heads, head_dim):
    # 1/sqrt(head_dim) is already folded into the Q weights/bias.
    outs = []
    for h in range(n_heads):
        s0 = h * head_dim
        q = q_all[:, s0:s0 + head_dim].astype(jnp.bfloat16)
        k = k_all[:, s0:s0 + head_dim].astype(jnp.bfloat16)
        v = v_all[:, s0:s0 + head_dim].astype(jnp.bfloat16)
        s = jnp.dot(q, k.T, preferred_element_type=jnp.float32) + mask
        s = s - jnp.max(s, axis=-1, keepdims=True)
        p = jnp.exp(s)
        p = p * pl.reciprocal(jnp.sum(p, axis=-1, keepdims=True), approx=True)
        outs.append(jnp.dot(p.astype(jnp.bfloat16), v,
                            preferred_element_type=jnp.float32))
    return outs[0] if len(outs) == 1 else jnp.concatenate(outs, axis=-1)


def _attn_group_kernel(q_ref, k_ref, v_ref, mask_ref, o_ref,
                       *, heads_per_group, head_dim):
    o = _attn_heads(q_ref[0], k_ref[0], v_ref[0], mask_ref[...],
                    heads_per_group, head_dim)
    o_ref[0, :, :] = o.astype(o_ref.dtype)       # single lane-dense store


def _attn_fused_kernel(qkv_ref, mask_ref, o_ref, *, n_heads, head_dim):
    D = n_heads * head_dim
    slab = qkv_ref[0]
    o = _attn_heads(slab[:, :D], slab[:, D:2 * D], slab[:, 2 * D:],
                    mask_ref[...], n_heads, head_dim)
    o_ref[0, :, :] = o.astype(o_ref.dtype)       # single full-D store


def attention(qkv, mask, *, n_heads, out_dtype=jnp.bfloat16):
    B, L, threeD = qkv.shape
    D = threeD // 3
    head_dim = D // n_heads

    # smallest head group whose combined width is a multiple of 128 lanes
    hpg = None
    for g in range(1, n_heads + 1):
        if n_heads % g == 0 and (g * head_dim) % 128 == 0:
            hpg = g
            break
    if hpg is None:
        hpg = n_heads
    gw = hpg * head_dim
    n_groups = n_heads // hpg

    if n_groups > 1:
        # grid over (batch, head group); q/k/v are sliced straight out of the
        # fused QKV slab by three BlockSpecs (no extra HBM split).
        return pl.pallas_call(
            functools.partial(_attn_group_kernel, heads_per_group=hpg,
                              head_dim=head_dim),
            out_shape=jax.ShapeDtypeStruct((B, L, D), out_dtype),
            grid=(B, n_groups),
            in_specs=[pl.BlockSpec((1, L, gw), lambda b, g: (b, 0, g)),
                      pl.BlockSpec((1, L, gw),
                                   lambda b, g: (b, 0, n_groups + g)),
                      pl.BlockSpec((1, L, gw),
                                   lambda b, g: (b, 0, 2 * n_groups + g)),
                      pl.BlockSpec((L, L), lambda b, g: (0, 0))],
            out_specs=pl.BlockSpec((1, L, gw), lambda b, g: (b, 0, g)),
            compiler_params=pltpu.CompilerParams(
                dimension_semantics=("parallel", "parallel"),
                vmem_limit_bytes=_VMEM_LIMIT),
        )(qkv, qkv, qkv, mask)

    # small-D fallback: all heads of one batch element per grid step
    return pl.pallas_call(
        functools.partial(_attn_fused_kernel, n_heads=n_heads,
                          head_dim=head_dim),
        out_shape=jax.ShapeDtypeStruct((B, L, D), out_dtype),
        grid=(B,),
        in_specs=[pl.BlockSpec((1, L, threeD), lambda b: (b, 0, 0)),
                  pl.BlockSpec((L, L), lambda b: (0, 0))],
        out_specs=pl.BlockSpec((1, L, D), lambda b: (b, 0, 0)),
        compiler_params=pltpu.CompilerParams(
            dimension_semantics=("parallel",),
            vmem_limit_bytes=_VMEM_LIMIT),
    )(qkv, mask)


# ----------------------- transformer orchestration ------------------------

def residual_block(x, p, n_heads, mask):
    # CLIP ResidualAttentionBlock: x += out_proj(attn(ln_1(x))); x += mlp(ln_2(x))
    B, L, D = x.shape
    x_flat = x.reshape(B * L, D)                                     # f32 residual stream
    # fused ln_1 + QKV projection (scale folded into Q weights) -> bf16 slab
    qkv = ln_linear(x_flat, p["ln1_g"], p["ln1_b"],
                    p["in_proj_w"], p["in_proj_b"],
                    out_dtype=jnp.bfloat16)                          # (B*L, 3D) bf16
    attn_o = attention(qkv.reshape(B, L, 3 * D), mask, n_heads=n_heads)   # bf16
    # out-proj with fused residual add
    x_flat = linear(attn_o.reshape(B * L, D),
                    p["out_proj_w"], p["out_proj_b"], residual=x_flat,
                    out_dtype=jnp.float32)
    # fused ln_2 + MLP fc + QuickGELU -> bf16 hidden
    h = ln_linear(x_flat, p["ln2_g"], p["ln2_b"], p["fc_w"], p["fc_b"],
                  activation="quick_gelu", out_dtype=jnp.bfloat16)   # (B*L, 4D) bf16
    # MLP proj (K = 4D tiled) with fused residual add
    x_flat = linear(h, p["proj_w"], p["proj_b"], residual=x_flat,
                    out_dtype=jnp.float32)
    return x_flat.reshape(B, L, D)


def transformer_forward(x, deep_prompts, blocks, n_heads, mask, n_ctx):
    # combined = [x, deep_prompts, 0]: MaPLe/UMuDPT-style deep prompting — for
    # layer i >= 1 replace text tokens [1 : 1+n_ctx] with deep_prompts[i-1].
    # TODO(synk): exact insertion convention lives in the repo's custom
    # transformer; the standard MaPLe text-side replacement is implemented here.
    # TODO(synk): the per-layer prompt replacement could be folded into the
    # next layer's ln_linear/residual reads via a row mask to save one HBM pass.
    num_deep = deep_prompts.shape[0]
    for i, p in enumerate(blocks):
        if i > 0 and (i - 1) < num_deep:
            B, L, D = x.shape
            ctx = jnp.broadcast_to(deep_prompts[i - 1][None, :, :],
                                   (B, n_ctx, D)).astype(x.dtype)
            x = lax.dynamic_update_slice(x, ctx, (0, 1, 0))
        x = residual_block(x, p, n_heads, mask)
    return x


def text_encoder_forward(prompts, tokenized_prompts, deep_prompts, params,
                         *, n_heads, n_ctx):
    B, L, D = prompts.shape
    # pad the sequence axis so every tile is (8,128)-aligned (77 -> 128 for
    # real CLIP).  Padded key columns are killed by the causal mask and padded
    # query rows never reach the EOT gather, so the result is unchanged.
    L_pad = _round_up(L, 128) if L > 64 else _round_up(L, 8)
    x = prompts + params["pos_emb"].astype(prompts.dtype)[None, :, :]   # (B, L, D)
    if L_pad != L:
        x = jnp.pad(x, ((0, 0), (0, L_pad - L), (0, 0)))
    mask = jnp.triu(jnp.full((L_pad, L_pad), -1e9, dtype=jnp.float32), k=1)
    # transformer body runs in (B, L, D): row-wise math identical to the
    # reference (L, B, D) layout; attention is per-batch either way.
    x = transformer_forward(x, deep_prompts, params["blocks"], n_heads, mask,
                            n_ctx)
    x = layer_norm(x.reshape(B * L_pad, D), params["lnf_g"], params["lnf_b"])
    x = x.reshape(B, L_pad, D)
    eot = jnp.argmax(tokenized_prompts, axis=-1)                        # (B,)
    x_eot = x[jnp.arange(B), eot]                                       # (B, D) gather (glue)
    # final projection: M == B is too small to amortize a pallas_call
    return jnp.dot(x_eot.astype(jnp.bfloat16), params["text_projection"],
                   preferred_element_type=jnp.float32)                  # (B, proj_dim)


# ------------------------------ params / main ------------------------------

def init_params(key, L, D, n_layers, proj_dim):
    keys = jax.random.split(key, 2 + n_layers)

    def norm(k, shape, scale=0.02):
        return jax.random.normal(k, shape, dtype=jnp.float32) * scale

    blocks = []
    for i in range(n_layers):
        bk = jax.random.split(keys[2 + i], 4)
        blocks.append(dict(
            ln1_g=jnp.ones((D,), jnp.float32), ln1_b=jnp.zeros((D,), jnp.float32),
            in_proj_w=norm(bk[0], (D, 3 * D)), in_proj_b=jnp.zeros((3 * D,), jnp.float32),
            out_proj_w=norm(bk[1], (D, D)), out_proj_b=jnp.zeros((D,), jnp.float32),
            ln2_g=jnp.ones((D,), jnp.float32), ln2_b=jnp.zeros((D,), jnp.float32),
            fc_w=norm(bk[2], (D, 4 * D)), fc_b=jnp.zeros((4 * D,), jnp.float32),
            proj_w=norm(bk[3], (4 * D, D)), proj_b=jnp.zeros((D,), jnp.float32),
        ))
    return dict(
        pos_emb=norm(keys[0], (L, D)),
        lnf_g=jnp.ones((D,), jnp.float32), lnf_b=jnp.zeros((D,), jnp.float32),
        text_projection=norm(keys[1], (D, proj_dim)),
        blocks=blocks,
    )


def prepare_params(params, *, n_heads):
    # Fold the 1/sqrt(head_dim) attention scale into the Q slice of in_proj
    # (weights + bias) and cast matmul weights to bf16 (f32 accumulation in
    # the kernels).  LN params and biases stay f32.
    D = params["pos_emb"].shape[1]
    scale = 1.0 / math.sqrt(D // n_heads)
    q_scale = jnp.concatenate([jnp.full((D,), scale, jnp.float32),
                               jnp.ones((2 * D,), jnp.float32)])
    new_blocks = []
    for p in params["blocks"]:
        np_ = dict(p)
        np_["in_proj_w"] = (p["in_proj_w"] * q_scale[None, :]).astype(jnp.bfloat16)
        np_["in_proj_b"] = p["in_proj_b"] * q_scale
        np_["out_proj_w"] = p["out_proj_w"].astype(jnp.bfloat16)
        np_["fc_w"] = p["fc_w"].astype(jnp.bfloat16)
        np_["proj_w"] = p["proj_w"].astype(jnp.bfloat16)
        new_blocks.append(np_)
    new = dict(params)
    new["blocks"] = new_blocks
    new["text_projection"] = params["text_projection"].astype(jnp.bfloat16)
    return new


if __name__ == "__main__":
    B, L, D, H = 2, 8, 32, 4
    n_layers, n_ctx, proj_dim, num_deep = 2, 2, 16, 1

    key = jax.random.PRNGKey(0)
    k_param, k_prompt, k_deep, k_tok = jax.random.split(key, 4)

    params = prepare_params(init_params(k_param, L, D, n_layers, proj_dim),
                            n_heads=H)
    prompts = jax.random.normal(k_prompt, (B, L, D), dtype=jnp.float32) * 0.02
    deep_prompts = jax.random.normal(k_deep, (num_deep, n_ctx, D),
                                     dtype=jnp.float32) * 0.02
    tokenized_prompts = jax.random.randint(k_tok, (B, L), 1, 100, dtype=jnp.int32)
    eot_pos = jnp.array([5, 7], dtype=jnp.int32)
    tokenized_prompts = tokenized_prompts.at[jnp.arange(B), eot_pos].set(49407)

    fwd = jax.jit(functools.partial(text_encoder_forward, n_heads=H, n_ctx=n_ctx))
    out = fwd(prompts, tokenized_prompts, deep_prompts, params)
    out = jax.block_until_ready(out)
    assert out.shape == (B, proj_dim), out.shape
    assert bool(jnp.all(jnp.isfinite(out)))
    print("KERNEL_OK")
</pallas_src>

<mosaic_0001>
module attributes {stable_mosaic.version = 11 : i64} {
  func.func @_ln_linear_kernel(%arg0: i32, %arg1: i32, %arg2: memref<16x32xf32, #tpu.memory_space<vmem>>, %arg3: memref<1x32xf32, #tpu.memory_space<vmem>>, %arg4: memref<1x32xf32, #tpu.memory_space<vmem>>, %arg5: memref<32x96xbf16, #tpu.memory_space<vmem>>, %arg6: memref<1x96xf32, #tpu.memory_space<vmem>>, %arg7: memref<16x96xbf16, #tpu.memory_space<vmem>>, %arg8: memref<16x32xbf16, #tpu.memory_space<vmem>>) attributes {dimension_semantics = [#tpu.dimension_semantics<parallel>, #tpu.dimension_semantics<arbitrary>], iteration_bounds = array<i64: 1, 1>, scalar_prefetch = 0 : i64, scratch_operands = 1 : i64, tpu.core_type = #tpu.core_type<tc>, window_params = [{transform_indices = @transform_0, window_bounds = array<i64: 16, 32>}, {pipeline_mode = #tpu.pipeline_mode<synchronous>, transform_indices = @transform_1, window_bounds = array<i64: 1, 32>}, {pipeline_mode = #tpu.pipeline_mode<synchronous>, transform_indices = @transform_2, window_bounds = array<i64: 1, 32>}, {transform_indices = @transform_3, window_bounds = array<i64: 32, 96>}, {transform_indices = @transform_4, window_bounds = array<i64: 1, 96>}, {transform_indices = @transform_5, window_bounds = array<i64: 16, 96>}]} {
    %c0_i32 = arith.constant 0 : i32
    %0 = arith.cmpi eq, %arg1, %c0_i32 : i32
    %1 = arith.extui %0 : i1 to i32
    %c0_i32_0 = arith.constant 0 : i32
    %2 = arith.cmpi ne, %1, %c0_i32_0 : i32
    scf.if %2 {
      %c0_8 = arith.constant 0 : index
      %c0_9 = arith.constant 0 : index
      %11 = vector.load %arg2[%c0_8, %c0_9] : memref<16x32xf32, #tpu.memory_space<vmem>>, vector<16x32xf32>
      %cst_10 = arith.constant dense<0.000000e+00> : vector<16xf32>
      %12 = vector.multi_reduction <add>, %11, %cst_10 [1] : vector<16x32xf32> to vector<16xf32>
      %13 = vector.shape_cast %12 : vector<16xf32> to vector<16x1xf32>
      %cst_11 = arith.constant 3.200000e+01 : f32
      %14 = vector.broadcast %cst_11 : f32 to vector<16x1xf32>
      %15 = arith.divf %13, %14 : vector<16x1xf32>
      %16 = vector.broadcast %15 : vector<16x1xf32> to vector<16x32xf32>
      %17 = arith.subf %11, %16 : vector<16x32xf32>
      %18 = arith.mulf %17, %17 : vector<16x32xf32>
      %cst_12 = arith.constant dense<0.000000e+00> : vector<16xf32>
      %19 = vector.multi_reduction <add>, %18, %cst_12 [1] : vector<16x32xf32> to vector<16xf32>
      %20 = vector.shape_cast %19 : vector<16xf32> to vector<16x1xf32>
      %cst_13 = arith.constant 3.200000e+01 : f32
      %21 = vector.broadcast %cst_13 : f32 to vector<16x1xf32>
      %22 = arith.divf %20, %21 : vector<16x1xf32>
      %cst_14 = arith.constant 9.99999974E-6 : f32
      %23 = vector.broadcast %cst_14 : f32 to vector<16x1xf32>
      %24 = arith.addf %22, %23 : vector<16x1xf32>
      %25 = math.rsqrt %24 : vector<16x1xf32>
      %26 = vector.broadcast %25 : vector<16x1xf32> to vector<16x32xf32>
      %27 = arith.mulf %17, %26 : vector<16x32xf32>
      %c0_15 = arith.constant 0 : index
      %c0_16 = arith.constant 0 : index
      %28 = vector.load %arg3[%c0_15, %c0_16] : memref<1x32xf32, #tpu.memory_space<vmem>>, vector<1x32xf32>
      %29 = vector.broadcast %28 : vector<1x32xf32> to vector<16x32xf32>
      %30 = arith.mulf %27, %29 : vector<16x32xf32>
      %c0_17 = arith.constant 0 : index
      %c0_18 = arith.constant 0 : index
      %31 = vector.load %arg4[%c0_17, %c0_18] : memref<1x32xf32, #tpu.memory_space<vmem>>, vector<1x32xf32>
      %32 = vector.broadcast %31 : vector<1x32xf32> to vector<16x32xf32>
      %33 = arith.addf %30, %32 : vector<16x32xf32>
      %34 = arith.truncf %33 : vector<16x32xf32> to vector<16x32xbf16>
      %c0_19 = arith.constant 0 : index
      %c0_20 = arith.constant 0 : index
      %35 = vector.load %arg8[%c0_19, %c0_20] : memref<16x32xbf16, #tpu.memory_space<vmem>>, vector<16x32xbf16>
      tpu.vector_store %arg8[%c0_19, %c0_20], %34 {strides = array<i32>} : memref<16x32xbf16, #tpu.memory_space<vmem>>, vector<16x32xbf16>,
    } else {
    }
    %c0 = arith.constant 0 : index
    %c0_1 = arith.constant 0 : index
    %3 = vector.load %arg8[%c0, %c0_1] : memref<16x32xbf16, #tpu.memory_space<vmem>>, vector<16x32xbf16>
    %c0_2 = arith.constant 0 : index
    %c0_3 = arith.constant 0 : index
    %4 = vector.load %arg5[%c0_2, %c0_3] : memref<32x96xbf16, #tpu.memory_space<vmem>>, vector<32x96xbf16>
    %cst = arith.constant dense<0.000000e+00> : vector<16x96xf32>
    %5 = tpu.matmul %3, %4, %cst {dimension_numbers = #tpu.dot_dimension_numbers<[1], [0], [0], [1], [0, 0, 1, 1], [], []>} : vector<16x32xbf16>, vector<32x96xbf16>, vector<16x96xf32> -> vector<16x96xf32>
    %c0_4 = arith.constant 0 : index
    %c0_5 = arith.constant 0 : index
    %6 = vector.load %arg6[%c0_4, %c0_5] : memref<1x96xf32, #tpu.memory_space<vmem>>, vector<1x96xf32>
    %7 = vector.broadcast %6 : vector<1x96xf32> to vector<16x96xf32>
    %8 = arith.addf %5, %7 : vector<16x96xf32>
    %9 = arith.truncf %8 : vector<16x96xf32> to vector<16x96xbf16>
    %c0_6 = arith.constant 0 : index
    %c0_7 = arith.constant 0 : index
    %10 = vector.load %arg7[%c0_6, %c0_7] : memref<16x96xbf16, #tpu.memory_space<vmem>>, vector<16x96xbf16>
    tpu.vector_store %arg7[%c0_6, %c0_7], %9 {strides = array<i32>} : memref<16x96xbf16, #tpu.memory_space<vmem>>, vector<16x96xbf16>,
    return
  }
  func.func @transform_0(%arg0: i32, %arg1: i32) -> (i32, i32) {
    %c0_i32 = arith.constant 0 : i32
    %c0_i32_0 = arith.constant 0 : i32
    return %arg0, %c0_i32 : i32, i32
  }
  func.func @transform_1(%arg0: i32, %arg1: i32) -> (i32, i32) {
    %c0_i32 = arith.constant 0 : i32
    %c0_i32_0 = arith.constant 0 : i32
    %c0_i32_1 = arith.constant 0 : i32
    return %c0_i32, %c0_i32_0 : i32, i32
  }
  func.func @transform_2(%arg0: i32, %arg1: i32) -> (i32, i32) {
    %c0_i32 = arith.constant 0 : i32
    %c0_i32_0 = arith.constant 0 : i32
    %c0_i32_1 = arith.constant 0 : i32
    return %c0_i32, %c0_i32_0 : i32, i32
  }
  func.func @transform_3(%arg0: i32, %arg1: i32) -> (i32, i32) {
    %c0_i32 = arith.constant 0 : i32
    %c0_i32_0 = arith.constant 0 : i32
    return %c0_i32, %arg1 : i32, i32
  }
  func.func @transform_4(%arg0: i32, %arg1: i32) -> (i32, i32) {
    %c0_i32 = arith.constant 0 : i32
    %c0_i32_0 = arith.constant 0 : i32
    return %c0_i32, %arg1 : i32, i32
  }
  func.func @transform_5(%arg0: i32, %arg1: i32) -> (i32, i32) {
    %c0_i32 = arith.constant 0 : i32
    return %arg0, %arg1 : i32, i32
  }
}

module attributes {stable_mosaic.version = 11 : i64} {
  func.func @_attn_fused_kernel(%arg0: i32, %arg1: memref<1x8x96xbf16, #tpu.memory_space<vmem>>, %arg2: memref<8x8xf32, #tpu.memory_space<vmem>>, %arg3: memref<1x8x32xbf16, #tpu.memory_space<vmem>>) attributes {dimension_semantics = [#tpu.dimension_semantics<parallel>], iteration_bounds = array<i64: 2>, scalar_prefetch = 0 : i64, scratch_operands = 0 : i64, tpu.core_type = #tpu.core_type<tc>, window_params = [{transform_indices = @transform_0, window_bounds = array<i64: 1, 8, 96>}, {pipeline_mode = #tpu.pipeline_mode<synchronous>, transform_indices = @transform_1, window_bounds = array<i64: 8, 8>}, {transform_indices = @transform_2, window_bounds = array<i64: 1, 8, 32>}]} {
    %c0 = arith.constant 0 : index
    %c0_0 = arith.constant 0 : index
    %c0_1 = arith.constant 0 : index
    %0 = vector.load %arg1[%c0, %c0_0, %c0_1] : memref<1x8x96xbf16, #tpu.memory_space<vmem>>, vector<1x8x96xbf16>
    %1 = vector.shape_cast %0 : vector<1x8x96xbf16> to vector<8x96xbf16>
    %2 = vector.extract_strided_slice %1 {offsets = [0, 0], sizes = [8, 32], strides = [1, 1]} : vector<8x96xbf16> to vector<8x32xbf16>
    %3 = vector.extract_strided_slice %1 {offsets = [0, 32], sizes = [8, 32], strides = [1, 1]} : vector<8x96xbf16> to vector<8x32xbf16>
    %4 = vector.extract_strided_slice %1 {offsets = [0, 64], sizes = [8, 32], strides = [1, 1]} : vector<8x96xbf16> to vector<8x32xbf16>
    %c0_2 = arith.constant 0 : index
    %c0_3 = arith.constant 0 : index
    %5 = vector.load %arg2[%c0_2, %c0_3] : memref<8x8xf32, #tpu.memory_space<vmem>>, vector<8x8xf32>
    %6 = vector.extract_strided_slice %2 {offsets = [0, 0], sizes = [8, 8], strides = [1, 1]} : vector<8x32xbf16> to vector<8x8xbf16>
    %7 = vector.extract_strided_slice %3 {offsets = [0, 0], sizes = [8, 8], strides = [1, 1]} : vector<8x32xbf16> to vector<8x8xbf16>
    %8 = vector.extract_strided_slice %4 {offsets = [0, 0], sizes = [8, 8], strides = [1, 1]} : vector<8x32xbf16> to vector<8x8xbf16>
    %9 = tpu.transpose %7, [1, 0] : vector<8x8xbf16> -> vector<8x8xbf16>
    %cst = arith.constant dense<0.000000e+00> : vector<8x8xf32>
    %10 = tpu.matmul %6, %9, %cst {dimension_numbers = #tpu.dot_dimension_numbers<[1], [0], [0], [1], [0, 0, 1, 1], [], []>} : vector<8x8xbf16>, vector<8x8xbf16>, vector<8x8xf32> -> vector<8x8xf32>
    %11 = arith.addf %10, %5 : vector<8x8xf32>
    %cst_4 = arith.constant dense<0xFF800000> : vector<8xf32>
    %12 = vector.multi_reduction <maximumf>, %11, %cst_4 [1] : vector<8x8xf32> to vector<8xf32>
    %13 = vector.shape_cast %12 : vector<8xf32> to vector<8x1xf32>
    %14 = vector.broadcast %13 : vector<8x1xf32> to vector<8x8xf32>
    %15 = arith.subf %11, %14 : vector<8x8xf32>
    %16 = math.exp %15 : vector<8x8xf32>
    %cst_5 = arith.constant dense<0.000000e+00> : vector<8xf32>
    %17 = vector.multi_reduction <add>, %16, %cst_5 [1] : vector<8x8xf32> to vector<8xf32>
    %18 = vector.shape_cast %17 : vector<8xf32> to vector<8x1xf32>
    %19 = tpu.reciprocal %18 {approx = true} : vector<8x1xf32> -> vector<8x1xf32>
    %20 = vector.broadcast %19 : vector<8x1xf32> to vector<8x8xf32>
    %21 = arith.mulf %16, %20 : vector<8x8xf32>
    %22 = arith.truncf %21 : vector<8x8xf32> to vector<8x8xbf16>
    %cst_6 = arith.constant dense<0.000000e+00> : vector<8x8xf32>
    %23 = tpu.matmul %22, %8, %cst_6 {dimension_numbers = #tpu.dot_dimension_numbers<[1], [0], [0], [1], [0, 0, 1, 1], [], []>} : vector<8x8xbf16>, vector<8x8xbf16>, vector<8x8xf32> -> vector<8x8xf32>
    %24 = vector.extract_strided_slice %2 {offsets = [0, 8], sizes = [8, 8], strides = [1, 1]} : vector<8x32xbf16> to vector<8x8xbf16>
    %25 = vector.extract_strided_slice %3 {offsets = [0, 8], sizes = [8, 8], strides = [1, 1]} : vector<8x32xbf16> to vector<8x8xbf16>
    %26 = vector.extract_strided_slice %4 {offsets = [0, 8], sizes = [8, 8], strides = [1, 1]} : vector<8x32xbf16> to vector<8x8xbf16>
    %27 = tpu.transpose %25, [1, 0] : vector<8x8xbf16> -> vector<8x8xbf16>
    %cst_7 = arith.constant dense<0.000000e+00> : vector<8x8xf32>
    %28 = tpu.matmul %24, %27, %cst_7 {dimension_numbers = #tpu.dot_dimension_numbers<[1], [0], [0], [1], [0, 0, 1, 1], [], []>} : vector<8x8xbf16>, vector<8x8xbf16>, vector<8x8xf32> -> vector<8x8xf32>
    %29 = arith.addf %28, %5 : vector<8x8xf32>
    %cst_8 = arith.constant dense<0xFF800000> : vector<8xf32>
    %30 = vector.multi_reduction <maximumf>, %29, %cst_8 [1] : vector<8x8xf32> to vector<8xf32>
    %31 = vector.shape_cast %30 : vector<8xf32> to vector<8x1xf32>
    %32 = vector.broadcast %31 : vector<8x1xf32> to vector<8x8xf32>
    %33 = arith.subf %29, %32 : vector<8x8xf32>
    %34 = math.exp %33 : vector<8x8xf32>
    %cst_9 = arith.constant dense<0.000000e+00> : vector<8xf32>
    %35 = vector.multi_reduction <add>, %34, %cst_9 [1] : vector<8x8xf32> to vector<8xf32>
    %36 = vector.shape_cast %35 : vector<8xf32> to vector<8x1xf32>
    %37 = tpu.reciprocal %36 {approx = true} : vector<8x1xf32> -> vector<8x1xf32>
    %38 = vector.broadcast %37 : vector<8x1xf32> to vector<8x8xf32>
    %39 = arith.mulf %34, %38 : vector<8x8xf32>
    %40 = arith.truncf %39 : vector<8x8xf32> to vector<8x8xbf16>
    %cst_10 = arith.constant dense<0.000000e+00> : vector<8x8xf32>
    %41 = tpu.matmul %40, %26, %cst_10 {dimension_numbers = #tpu.dot_dimension_numbers<[1], [0], [0], [1], [0, 0, 1, 1], [], []>} : vector<8x8xbf16>, vector<8x8xbf16>, vector<8x8xf32> -> vector<8x8xf32>
    %42 = vector.extract_strided_slice %2 {offsets = [0, 16], sizes = [8, 8], strides = [1, 1]} : vector<8x32xbf16> to vector<8x8xbf16>
    %43 = vector.extract_strided_slice %3 {offsets = [0, 16], sizes = [8, 8], strides = [1, 1]} : vector<8x32xbf16> to vector<8x8xbf16>
    %44 = vector.extract_strided_slice %4 {offsets = [0, 16], sizes = [8, 8], strides = [1, 1]} : vector<8x32xbf16> to vector<8x8xbf16>
    %45 = tpu.transpose %43, [1, 0] : vector<8x8xbf16> -> vector<8x8xbf16>
    %cst_11 = arith.constant dense<0.000000e+00> : vector<8x8xf32>
    %46 = tpu.matmul %42, %45, %cst_11 {dimension_numbers = #tpu.dot_dimension_numbers<[1], [0], [0], [1], [0, 0, 1, 1], [], []>} : vector<8x8xbf16>, vector<8x8xbf16>, vector<8x8xf32> -> vector<8x8xf32>
    %47 = arith.addf %46, %5 : vector<8x8xf32>
    %cst_12 = arith.constant dense<0xFF800000> : vector<8xf32>
    %48 = vector.multi_reduction <maximumf>, %47, %cst_12 [1] : vector<8x8xf32> to vector<8xf32>
    %49 = vector.shape_cast %48 : vector<8xf32> to vector<8x1xf32>
    %50 = vector.broadcast %49 : vector<8x1xf32> to vector<8x8xf32>
    %51 = arith.subf %47, %50 : vector<8x8xf32>
    %52 = math.exp %51 : vector<8x8xf32>
    %cst_13 = arith.constant dense<0.000000e+00> : vector<8xf32>
    %53 = vector.multi_reduction <add>, %52, %cst_13 [1] : vector<8x8xf32> to vector<8xf32>
    %54 = vector.shape_cast %53 : vector<8xf32> to vector<8x1xf32>
    %55 = tpu.reciprocal %54 {approx = true} : vector<8x1xf32> -> vector<8x1xf32>
    %56 = vector.broadcast %55 : vector<8x1xf32> to vector<8x8xf32>
    %57 = arith.mulf %52, %56 : vector<8x8xf32>
    %58 = arith.truncf %57 : vector<8x8xf32> to vector<8x8xbf16>
    %cst_14 = arith.constant dense<0.000000e+00> : vector<8x8xf32>
    %59 = tpu.matmul %58, %44, %cst_14 {dimension_numbers = #tpu.dot_dimension_numbers<[1], [0], [0], [1], [0, 0, 1, 1], [], []>} : vector<8x8xbf16>, vector<8x8xbf16>, vector<8x8xf32> -> vector<8x8xf32>
    %60 = vector.extract_strided_slice %2 {offsets = [0, 24], sizes = [8, 8], strides = [1, 1]} : vector<8x32xbf16> to vector<8x8xbf16>
    %61 = vector.extract_strided_slice %3 {offsets = [0, 24], sizes = [8, 8], strides = [1, 1]} : vector<8x32xbf16> to vector<8x8xbf16>
    %62 = vector.extract_strided_slice %4 {offsets = [0, 24], sizes = [8, 8], strides = [1, 1]} : vector<8x32xbf16> to vector<8x8xbf16>
    %63 = tpu.transpose %61, [1, 0] : vector<8x8xbf16> -> vector<8x8xbf16>
    %cst_15 = arith.constant dense<0.000000e+00> : vector<8x8xf32>
    %64 = tpu.matmul %60, %63, %cst_15 {dimension_numbers = #tpu.dot_dimension_numbers<[1], [0], [0], [1], [0, 0, 1, 1], [], []>} : vector<8x8xbf16>, vector<8x8xbf16>, vector<8x8xf32> -> vector<8x8xf32>
    %65 = arith.addf %64, %5 : vector<8x8xf32>
    %cst_16 = arith.constant dense<0xFF800000> : vector<8xf32>
    %66 = vector.multi_reduction <maximumf>, %65, %cst_16 [1] : vector<8x8xf32> to vector<8xf32>
    %67 = vector.shape_cast %66 : vector<8xf32> to vector<8x1xf32>
    %68 = vector.broadcast %67 : vector<8x1xf32> to vector<8x8xf32>
    %69 = arith.subf %65, %68 : vector<8x8xf32>
    %70 = math.exp %69 : vector<8x8xf32>
    %cst_17 = arith.constant dense<0.000000e+00> : vector<8xf32>
    %71 = vector.multi_reduction <add>, %70, %cst_17 [1] : vector<8x8xf32> to vector<8xf32>
    %72 = vector.shape_cast %71 : vector<8xf32> to vector<8x1xf32>
    %73 = tpu.reciprocal %72 {approx = true} : vector<8x1xf32> -> vector<8x1xf32>
    %74 = vector.broadcast %73 : vector<8x1xf32> to vector<8x8xf32>
    %75 = arith.mulf %70, %74 : vector<8x8xf32>
    %76 = arith.truncf %75 : vector<8x8xf32> to vector<8x8xbf16>
    %cst_18 = arith.constant dense<0.000000e+00> : vector<8x8xf32>
    %77 = tpu.matmul %76, %62, %cst_18 {dimension_numbers = #tpu.dot_dimension_numbers<[1], [0], [0], [1], [0, 0, 1, 1], [], []>} : vector<8x8xbf16>, vector<8x8xbf16>, vector<8x8xf32> -> vector<8x8xf32>
    %78 = tpu.concatenate %23, %41, %59, %77 in 1 : vector<8x8xf32>, vector<8x8xf32>, vector<8x8xf32>, vector<8x8xf32> -> vector<8x32xf32>
    %79 = arith.truncf %78 : vector<8x32xf32> to vector<8x32xbf16>
    %c0_19 = arith.constant 0 : index
    %c0_20 = arith.constant 0 : index
    %c0_21 = arith.constant 0 : index
    %80 = vector.load %arg3[%c0_19, %c0_20, %c0_21] : memref<1x8x32xbf16, #tpu.memory_space<vmem>>, vector<1x8x32xbf16>
    %81 = vector.shape_cast %80 : vector<1x8x32xbf16> to vector<8x32xbf16>
    %82 = vector.shape_cast %79 : vector<8x32xbf16> to vector<1x8x32xbf16>
    tpu.vector_store %arg3[%c0_19, %c0_20, %c0_21], %82 {strides = array<i32>} : memref<1x8x32xbf16, #tpu.memory_space<vmem>>, vector<1x8x32xbf16>,
    return
  }
  func.func @transform_0(%arg0: i32) -> (i32, i32, i32) {
    %c0_i32 = arith.constant 0 : i32
    %c0_i32_0 = arith.constant 0 : i32
    %c0_i32_1 = arith.constant 0 : i32
    return %arg0, %c0_i32, %c0_i32_0 : i32, i32, i32
  }
  func.func @transform_1(%arg0: i32) -> (i32, i32) {
    %c0_i32 = arith.constant 0 : i32
    %c0_i32_0 = arith.constant 0 : i32
    %c0_i32_1 = arith.constant 0 : i32
    return %c0_i32, %c0_i32_0 : i32, i32
  }
  func.func @transform_2(%arg0: i32) -> (i32, i32, i32) {
    %c0_i32 = arith.constant 0 : i32
    %c0_i32_0 = arith.constant 0 : i32
    %c0_i32_1 = arith.constant 0 : i32
    return %arg0, %c0_i32, %c0_i32_0 : i32, i32, i32
  }
}

module attributes {stable_mosaic.version = 11 : i64} {
  func.func @_linear_kernel(%arg0: i32, %arg1: i32, %arg2: i32, %arg3: memref<16x32xbf16, #tpu.memory_space<vmem>>, %arg4: memref<32x32xbf16, #tpu.memory_space<vmem>>, %arg5: memref<1x32xf32, #tpu.memory_space<vmem>>, %arg6: memref<16x32xf32, #tpu.memory_space<vmem>>, %arg7: memref<16x32xf32, #tpu.memory_space<vmem>>, %arg8: memref<16x32xf32, #tpu.memory_space<vmem>>) attributes {dimension_semantics = [#tpu.dimension_semantics<parallel>, #tpu.dimension_semantics<parallel>, #tpu.dimension_semantics<arbitrary>], iteration_bounds = array<i64: 1, 1, 1>, scalar_prefetch = 0 : i64, scratch_operands = 1 : i64, tpu.core_type = #tpu.core_type<tc>, window_params = [{transform_indices = @transform_0, window_bounds = array<i64: 16, 32>}, {transform_indices = @transform_1, window_bounds = array<i64: 32, 32>}, {transform_indices = @transform_2, window_bounds = array<i64: 1, 32>}, {transform_indices = @transform_3, window_bounds = array<i64: 16, 32>}, {transform_indices = @transform_4, window_bounds = array<i64: 16, 32>}]} {
    %c0_i32 = arith.constant 0 : i32
    %0 = arith.cmpi eq, %arg2, %c0_i32 : i32
    %1 = arith.extui %0 : i1 to i32
    %c0_i32_0 = arith.constant 0 : i32
    %2 = arith.cmpi ne, %1, %c0_i32_0 : i32
    scf.if %2 {
      %cst_10 = arith.constant 0.000000e+00 : f32
      %12 = vector.broadcast %cst_10 : f32 to vector<16x32xf32>
      %c0_11 = arith.constant 0 : index
      %c0_12 = arith.constant 0 : index
      %13 = vector.load %arg8[%c0_11, %c0_12] : memref<16x32xf32, #tpu.memory_space<vmem>>, vector<16x32xf32>
      tpu.vector_store %arg8[%c0_11, %c0_12], %12 {strides = array<i32>} : memref<16x32xf32, #tpu.memory_space<vmem>>, vector<16x32xf32>,
    } else {
    }
    %c0 = arith.constant 0 : index
    %c0_1 = arith.constant 0 : index
    %3 = vector.load %arg8[%c0, %c0_1] : memref<16x32xf32, #tpu.memory_space<vmem>>, vector<16x32xf32>
    %c0_2 = arith.constant 0 : index
    %c0_3 = arith.constant 0 : index
    %4 = vector.load %arg3[%c0_2, %c0_3] : memref<16x32xbf16, #tpu.memory_space<vmem>>, vector<16x32xbf16>
    %c0_4 = arith.constant 0 : index
    %c0_5 = arith.constant 0 : index
    %5 = vector.load %arg4[%c0_4, %c0_5] : memref<32x32xbf16, #tpu.memory_space<vmem>>, vector<32x32xbf16>
    %cst = arith.constant dense<0.000000e+00> : vector<16x32xf32>
    %6 = tpu.matmul %4, %5, %cst {dimension_numbers = #tpu.dot_dimension_numbers<[1], [0], [0], [1], [0, 0, 1, 1], [], []>} : vector<16x32xbf16>, vector<32x32xbf16>, vector<16x32xf32> -> vector<16x32xf32>
    %7 = arith.addf %3, %6 : vector<16x32xf32>
    %c0_6 = arith.constant 0 : index
    %c0_7 = arith.constant 0 : index
    %8 = vector.load %arg8[%c0_6, %c0_7] : memref<16x32xf32, #tpu.memory_space<vmem>>, vector<16x32xf32>
    tpu.vector_store %arg8[%c0_6, %c0_7], %7 {strides = array<i32>} : memref<16x32xf32, #tpu.memory_space<vmem>>, vector<16x32xf32>,
    %c0_i32_8 = arith.constant 0 : i32
    %9 = arith.cmpi eq, %arg2, %c0_i32_8 : i32
    %10 = arith.extui %9 : i1 to i32
    %c0_i32_9 = arith.constant 0 : i32
    %11 = arith.cmpi ne, %10, %c0_i32_9 : i32
    scf.if %11 {
      %c0_10 = arith.constant 0 : index
      %c0_11 = arith.constant 0 : index
      %12 = vector.load %arg8[%c0_10, %c0_11] : memref<16x32xf32, #tpu.memory_space<vmem>>, vector<16x32xf32>
      %c0_12 = arith.constant 0 : index
      %c0_13 = arith.constant 0 : index
      %13 = vector.load %arg5[%c0_12, %c0_13] : memref<1x32xf32, #tpu.memory_space<vmem>>, vector<1x32xf32>
      %14 = vector.broadcast %13 : vector<1x32xf32> to vector<16x32xf32>
      %15 = arith.addf %12, %14 : vector<16x32xf32>
      %c0_14 = arith.constant 0 : index
      %c0_15 = arith.constant 0 : index
      %16 = vector.load %arg6[%c0_14, %c0_15] : memref<16x32xf32, #tpu.memory_space<vmem>>, vector<16x32xf32>
      %17 = arith.addf %15, %16 : vector<16x32xf32>
      %c0_16 = arith.constant 0 : index
      %c0_17 = arith.constant 0 : index
      %18 = vector.load %arg7[%c0_16, %c0_17] : memref<16x32xf32, #tpu.memory_space<vmem>>, vector<16x32xf32>
      tpu.vector_store %arg7[%c0_16, %c0_17], %17 {strides = array<i32>} : memref<16x32xf32, #tpu.memory_space<vmem>>, vector<16x32xf32>,
    } else {
    }
    return
  }
  func.func @transform_0(%arg0: i32, %arg1: i32, %arg2: i32) -> (i32, i32) {
    %c0_i32 = arith.constant 0 : i32
    return %arg0, %arg2 : i32, i32
  }
  func.func @transform_1(%arg0: i32, %arg1: i32, %arg2: i32) -> (i32, i32) {
    %c0_i32 = arith.constant 0 : i32
    return %arg2, %arg1 : i32, i32
  }
  func.func @transform_2(%arg0: i32, %arg1: i32, %arg2: i32) -> (i32, i32) {
    %c0_i32 = arith.constant 0 : i32
    %c0_i32_0 = arith.constant 0 : i32
    return %c0_i32, %arg1 : i32, i32
  }
  func.func @transform_3(%arg0: i32, %arg1: i32, %arg2: i32) -> (i32, i32) {
    %c0_i32 = arith.constant 0 : i32
    return %arg0, %arg1 : i32, i32
  }
  func.func @transform_4(%arg0: i32, %arg1: i32, %arg2: i32) -> (i32, i32) {
    %c0_i32 = arith.constant 0 : i32
    return %arg0, %arg1 : i32, i32
  }
}

module attributes {stable_mosaic.version = 11 : i64} {
  func.func @_ln_linear_kernel(%arg0: i32, %arg1: i32, %arg2: memref<16x32xf32, #tpu.memory_space<vmem>>, %arg3: memref<1x32xf32, #tpu.memory_space<vmem>>, %arg4: memref<1x32xf32, #tpu.memory_space<vmem>>, %arg5: memref<32x128xbf16, #tpu.memory_space<vmem>>, %arg6: memref<1x128xf32, #tpu.memory_space<vmem>>, %arg7: memref<16x128xbf16, #tpu.memory_space<vmem>>, %arg8: memref<16x32xbf16, #tpu.memory_space<vmem>>) attributes {dimension_semantics = [#tpu.dimension_semantics<parallel>, #tpu.dimension_semantics<arbitrary>], iteration_bounds = array<i64: 1, 1>, scalar_prefetch = 0 : i64, scratch_operands = 1 : i64, tpu.core_type = #tpu.core_type<tc>, window_params = [{transform_indices = @transform_0, window_bounds = array<i64: 16, 32>}, {pipeline_mode = #tpu.pipeline_mode<synchronous>, transform_indices = @transform_1, window_bounds = array<i64: 1, 32>}, {pipeline_mode = #tpu.pipeline_mode<synchronous>, transform_indices = @transform_2, window_bounds = array<i64: 1, 32>}, {transform_indices = @transform_3, window_bounds = array<i64: 32, 128>}, {transform_indices = @transform_4, window_bounds = array<i64: 1, 128>}, {transform_indices = @transform_5, window_bounds = array<i64: 16, 128>}]} {
    %c0_i32 = arith.constant 0 : i32
    %0 = arith.cmpi eq, %arg1, %c0_i32 : i32
    %1 = arith.extui %0 : i1 to i32
    %c0_i32_0 = arith.constant 0 : i32
    %2 = arith.cmpi ne, %1, %c0_i32_0 : i32
    scf.if %2 {
      %c0_10 = arith.constant 0 : index
      %c0_11 = arith.constant 0 : index
      %19 = vector.load %arg2[%c0_10, %c0_11] : memref<16x32xf32, #tpu.memory_space<vmem>>, vector<16x32xf32>
      %cst_12 = arith.constant dense<0.000000e+00> : vector<16xf32>
      %20 = vector.multi_reduction <add>, %19, %cst_12 [1] : vector<16x32xf32> to vector<16xf32>
      %21 = vector.shape_cast %20 : vector<16xf32> to vector<16x1xf32>
      %cst_13 = arith.constant 3.200000e+01 : f32
      %22 = vector.broadcast %cst_13 : f32 to vector<16x1xf32>
      %23 = arith.divf %21, %22 : vector<16x1xf32>
      %24 = vector.broadcast %23 : vector<16x1xf32> to vector<16x32xf32>
      %25 = arith.subf %19, %24 : vector<16x32xf32>
      %26 = arith.mulf %25, %25 : vector<16x32xf32>
      %cst_14 = arith.constant dense<0.000000e+00> : vector<16xf32>
      %27 = vector.multi_reduction <add>, %26, %cst_14 [1] : vector<16x32xf32> to vector<16xf32>
      %28 = vector.shape_cast %27 : vector<16xf32> to vector<16x1xf32>
      %cst_15 = arith.constant 3.200000e+01 : f32
      %29 = vector.broadcast %cst_15 : f32 to vector<16x1xf32>
      %30 = arith.divf %28, %29 : vector<16x1xf32>
      %cst_16 = arith.constant 9.99999974E-6 : f32
      %31 = vector.broadcast %cst_16 : f32 to vector<16x1xf32>
      %32 = arith.addf %30, %31 : vector<16x1xf32>
      %33 = math.rsqrt %32 : vector<16x1xf32>
      %34 = vector.broadcast %33 : vector<16x1xf32> to vector<16x32xf32>
      %35 = arith.mulf %25, %34 : vector<16x32xf32>
      %c0_17 = arith.constant 0 : index
      %c0_18 = arith.constant 0 : index
      %36 = vector.load %arg3[%c0_17, %c0_18] : memref<1x32xf32, #tpu.memory_space<vmem>>, vector<1x32xf32>
      %37 = vector.broadcast %36 : vector<1x32xf32> to vector<16x32xf32>
      %38 = arith.mulf %35, %37 : vector<16x32xf32>
      %c0_19 = arith.constant 0 : index
      %c0_20 = arith.constant 0 : index
      %39 = vector.load %arg4[%c0_19, %c0_20] : memref<1x32xf32, #tpu.memory_space<vmem>>, vector<1x32xf32>
      %40 = vector.broadcast %39 : vector<1x32xf32> to vector<16x32xf32>
      %41 = arith.addf %38, %40 : vector<16x32xf32>
      %42 = arith.truncf %41 : vector<16x32xf32> to vector<16x32xbf16>
      %c0_21 = arith.constant 0 : index
      %c0_22 = arith.constant 0 : index
      %43 = vector.load %arg8[%c0_21, %c0_22] : memref<16x32xbf16, #tpu.memory_space<vmem>>, vector<16x32xbf16>
      tpu.vector_store %arg8[%c0_21, %c0_22], %42 {strides = array<i32>} : memref<16x32xbf16, #tpu.memory_space<vmem>>, vector<16x32xbf16>,
    } else {
    }
    %c0 = arith.constant 0 : index
    %c0_1 = arith.constant 0 : index
    %3 = vector.load %arg8[%c0, %c0_1] : memref<16x32xbf16, #tpu.memory_space<vmem>>, vector<16x32xbf16>
    %c0_2 = arith.constant 0 : index
    %c0_3 = arith.constant 0 : index
    %4 = vector.load %arg5[%c0_2, %c0_3] : memref<32x128xbf16, #tpu.memory_space<vmem>>, vector<32x128xbf16>
    %cst = arith.constant dense<0.000000e+00> : vector<16x128xf32>
    %5 = tpu.matmul %3, %4, %cst {dimension_numbers = #tpu.dot_dimension_numbers<[1], [0], [0], [1], [0, 0, 1, 1], [], []>} : vector<16x32xbf16>, vector<32x128xbf16>, vector<16x128xf32> -> vector<16x128xf32>
    %c0_4 = arith.constant 0 : index
    %c0_5 = arith.constant 0 : index
    %6 = vector.load %arg6[%c0_4, %c0_5] : memref<1x128xf32, #tpu.memory_space<vmem>>, vector<1x128xf32>
    %7 = vector.broadcast %6 : vector<1x128xf32> to vector<16x128xf32>
    %8 = arith.addf %5, %7 : vector<16x128xf32>
    %cst_6 = arith.constant 1.702000e+00 : f32
    %9 = vector.broadcast %cst_6 : f32 to vector<16x128xf32>
    %10 = arith.mulf %9, %8 : vector<16x128xf32>
    %11 = arith.negf %10 : vector<16x128xf32>
    %12 = math.exp %11 : vector<16x128xf32>
    %cst_7 = arith.constant 1.000000e+00 : f32
    %13 = vector.broadcast %cst_7 : f32 to vector<16x128xf32>
    %14 = arith.addf %13, %12 : vector<16x128xf32>
    %15 = arith.divf %13, %14 : vector<16x128xf32>
    %16 = arith.mulf %8, %15 : vector<16x128xf32>
    %17 = arith.truncf %16 : vector<16x128xf32> to vector<16x128xbf16>
    %c0_8 = arith.constant 0 : index
    %c0_9 = arith.constant 0 : index
    %18 = vector.load %arg7[%c0_8, %c0_9] : memref<16x128xbf16, #tpu.memory_space<vmem>>, vector<16x128xbf16>
    tpu.vector_store %arg7[%c0_8, %c0_9], %17 {strides = array<i32>} : memref<16x128xbf16, #tpu.memory_space<vmem>>, vector<16x128xbf16>,
    return
  }
  func.func @transform_0(%arg0: i32, %arg1: i32) -> (i32, i32) {
    %c0_i32 = arith.constant 0 : i32
    %c0_i32_0 = arith.constant 0 : i32
    return %arg0, %c0_i32 : i32, i32
  }
  func.func @transform_1(%arg0: i32, %arg1: i32) -> (i32, i32) {
    %c0_i32 = arith.constant 0 : i32
    %c0_i32_0 = arith.constant 0 : i32
    %c0_i32_1 = arith.constant 0 : i32
    return %c0_i32, %c0_i32_0 : i32, i32
  }
  func.func @transform_2(%arg0: i32, %arg1: i32) -> (i32, i32) {
    %c0_i32 = arith.constant 0 : i32
    %c0_i32_0 = arith.constant 0 : i32
    %c0_i32_1 = arith.constant 0 : i32
    return %c0_i32, %c0_i32_0 : i32, i32
  }
  func.func @transform_3(%arg0: i32, %arg1: i32) -> (i32, i32) {
    %c0_i32 = arith.constant 0 : i32
    %c0_i32_0 = arith.constant 0 : i32
    return %c0_i32, %arg1 : i32, i32
  }
  func.func @transform_4(%arg0: i32, %arg1: i32) -> (i32, i32) {
    %c0_i32 = arith.constant 0 : i32
    %c0_i32_0 = arith.constant 0 : i32
    return %c0_i32, %arg1 : i32, i32
  }
  func.func @transform_5(%arg0: i32, %arg1: i32) -> (i32, i32) {
    %c0_i32 = arith.constant 0 : i32
    return %arg0, %arg1 : i32, i32
  }
}

module attributes {stable_mosaic.version = 11 : i64} {
  func.func @_linear_kernel(%arg0: i32, %arg1: i32, %arg2: i32, %arg3: memref<16x128xbf16, #tpu.memory_space<vmem>>, %arg4: memref<128x32xbf16, #tpu.memory_space<vmem>>, %arg5: memref<1x32xf32, #tpu.memory_space<vmem>>, %arg6: memref<16x32xf32, #tpu.memory_space<vmem>>, %arg7: memref<16x32xf32, #tpu.memory_space<vmem>>, %arg8: memref<16x32xf32, #tpu.memory_space<vmem>>) attributes {dimension_semantics = [#tpu.dimension_semantics<parallel>, #tpu.dimension_semantics<parallel>, #tpu.dimension_semantics<arbitrary>], iteration_bounds = array<i64: 1, 1, 1>, scalar_prefetch = 0 : i64, scratch_operands = 1 : i64, tpu.core_type = #tpu.core_type<tc>, window_params = [{transform_indices = @transform_0, window_bounds = array<i64: 16, 128>}, {transform_indices = @transform_1, window_bounds = array<i64: 128, 32>}, {transform_indices = @transform_2, window_bounds = array<i64: 1, 32>}, {transform_indices = @transform_3, window_bounds = array<i64: 16, 32>}, {transform_indices = @transform_4, window_bounds = array<i64: 16, 32>}]} {
    %c0_i32 = arith.constant 0 : i32
    %0 = arith.cmpi eq, %arg2, %c0_i32 : i32
    %1 = arith.extui %0 : i1 to i32
    %c0_i32_0 = arith.constant 0 : i32
    %2 = arith.cmpi ne, %1, %c0_i32_0 : i32
    scf.if %2 {
      %cst_10 = arith.constant 0.000000e+00 : f32
      %12 = vector.broadcast %cst_10 : f32 to vector<16x32xf32>
      %c0_11 = arith.constant 0 : index
      %c0_12 = arith.constant 0 : index
      %13 = vector.load %arg8[%c0_11, %c0_12] : memref<16x32xf32, #tpu.memory_space<vmem>>, vector<16x32xf32>
      tpu.vector_store %arg8[%c0_11, %c0_12], %12 {strides = array<i32>} : memref<16x32xf32, #tpu.memory_space<vmem>>, vector<16x32xf32>,
    } else {
    }
    %c0 = arith.constant 0 : index
    %c0_1 = arith.constant 0 : index
    %3 = vector.load %arg8[%c0, %c0_1] : memref<16x32xf32, #tpu.memory_space<vmem>>, vector<16x32xf32>
    %c0_2 = arith.constant 0 : index
    %c0_3 = arith.constant 0 : index
    %4 = vector.load %arg3[%c0_2, %c0_3] : memref<16x128xbf16, #tpu.memory_space<vmem>>, vector<16x128xbf16>
    %c0_4 = arith.constant 0 : index
    %c0_5 = arith.constant 0 : index
    %5 = vector.load %arg4[%c0_4, %c0_5] : memref<128x32xbf16, #tpu.memory_space<vmem>>, vector<128x32xbf16>
    %cst = arith.constant dense<0.000000e+00> : vector<16x32xf32>
    %6 = tpu.matmul %4, %5, %cst {dimension_numbers = #tpu.dot_dimension_numbers<[1], [0], [0], [1], [0, 0, 1, 1], [], []>} : vector<16x128xbf16>, vector<128x32xbf16>, vector<16x32xf32> -> vector<16x32xf32>
    %7 = arith.addf %3, %6 : vector<16x32xf32>
    %c0_6 = arith.constant 0 : index
    %c0_7 = arith.constant 0 : index
    %8 = vector.load %arg8[%c0_6, %c0_7] : memref<16x32xf32, #tpu.memory_space<vmem>>, vector<16x32xf32>
    tpu.vector_store %arg8[%c0_6, %c0_7], %7 {strides = array<i32>} : memref<16x32xf32, #tpu.memory_space<vmem>>, vector<16x32xf32>,
    %c0_i32_8 = arith.constant 0 : i32
    %9 = arith.cmpi eq, %arg2, %c0_i32_8 : i32
    %10 = arith.extui %9 : i1 to i32
    %c0_i32_9 = arith.constant 0 : i32
    %11 = arith.cmpi ne, %10, %c0_i32_9 : i32
    scf.if %11 {
      %c0_10 = arith.constant 0 : index
      %c0_11 = arith.constant 0 : index
      %12 = vector.load %arg8[%c0_10, %c0_11] : memref<16x32xf32, #tpu.memory_space<vmem>>, vector<16x32xf32>
      %c0_12 = arith.constant 0 : index
      %c0_13 = arith.constant 0 : index
      %13 = vector.load %arg5[%c0_12, %c0_13] : memref<1x32xf32, #tpu.memory_space<vmem>>, vector<1x32xf32>
      %14 = vector.broadcast %13 : vector<1x32xf32> to vector<16x32xf32>
      %15 = arith.addf %12, %14 : vector<16x32xf32>
      %c0_14 = arith.constant 0 : index
      %c0_15 = arith.constant 0 : index
      %16 = vector.load %arg6[%c0_14, %c0_15] : memref<16x32xf32, #tpu.memory_space<vmem>>, vector<16x32xf32>
      %17 = arith.addf %15, %16 : vector<16x32xf32>
      %c0_16 = arith.constant 0 : index
      %c0_17 = arith.constant 0 : index
      %18 = vector.load %arg7[%c0_16, %c0_17] : memref<16x32xf32, #tpu.memory_space<vmem>>, vector<16x32xf32>
      tpu.vector_store %arg7[%c0_16, %c0_17], %17 {strides = array<i32>} : memref<16x32xf32, #tpu.memory_space<vmem>>, vector<16x32xf32>,
    } else {
    }
    return
  }
  func.func @transform_0(%arg0: i32, %arg1: i32, %arg2: i32) -> (i32, i32) {
    %c0_i32 = arith.constant 0 : i32
    return %arg0, %arg2 : i32, i32
  }
  func.func @transform_1(%arg0: i32, %arg1: i32, %arg2: i32) -> (i32, i32) {
    %c0_i32 = arith.constant 0 : i32
    return %arg2, %arg1 : i32, i32
  }
  func.func @transform_2(%arg0: i32, %arg1: i32, %arg2: i32) -> (i32, i32) {
    %c0_i32 = arith.constant 0 : i32
    %c0_i32_0 = arith.constant 0 : i32
    return %c0_i32, %arg1 : i32, i32
  }
  func.func @transform_3(%arg0: i32, %arg1: i32, %arg2: i32) -> (i32, i32) {
    %c0_i32 = arith.constant 0 : i32
    return %arg0, %arg1 : i32, i32
  }
  func.func @transform_4(%arg0: i32, %arg1: i32, %arg2: i32) -> (i32, i32) {
    %c0_i32 = arith.constant 0 : i32
    return %arg0, %arg1 : i32, i32
  }
}

module attributes {stable_mosaic.version = 11 : i64} {
  func.func @_ln_linear_kernel(%arg0: i32, %arg1: i32, %arg2: memref<16x32xf32, #tpu.memory_space<vmem>>, %arg3: memref<1x32xf32, #tpu.memory_space<vmem>>, %arg4: memref<1x32xf32, #tpu.memory_space<vmem>>, %arg5: memref<32x96xbf16, #tpu.memory_space<vmem>>, %arg6: memref<1x96xf32, #tpu.memory_space<vmem>>, %arg7: memref<16x96xbf16, #tpu.memory_space<vmem>>, %arg8: memref<16x32xbf16, #tpu.memory_space<vmem>>) attributes {dimension_semantics = [#tpu.dimension_semantics<parallel>, #tpu.dimension_semantics<arbitrary>], iteration_bounds = array<i64: 1, 1>, scalar_prefetch = 0 : i64, scratch_operands = 1 : i64, tpu.core_type = #tpu.core_type<tc>, window_params = [{transform_indices = @transform_0, window_bounds = array<i64: 16, 32>}, {pipeline_mode = #tpu.pipeline_mode<synchronous>, transform_indices = @transform_1, window_bounds = array<i64: 1, 32>}, {pipeline_mode = #tpu.pipeline_mode<synchronous>, transform_indices = @transform_2, window_bounds = array<i64: 1, 32>}, {transform_indices = @transform_3, window_bounds = array<i64: 32, 96>}, {transform_indices = @transform_4, window_bounds = array<i64: 1, 96>}, {transform_indices = @transform_5, window_bounds = array<i64: 16, 96>}]} {
    %c0_i32 = arith.constant 0 : i32
    %0 = arith.cmpi eq, %arg1, %c0_i32 : i32
    %1 = arith.extui %0 : i1 to i32
    %c0_i32_0 = arith.constant 0 : i32
    %2 = arith.cmpi ne, %1, %c0_i32_0 : i32
    scf.if %2 {
      %c0_8 = arith.constant 0 : index
      %c0_9 = arith.constant 0 : index
      %11 = vector.load %arg2[%c0_8, %c0_9] : memref<16x32xf32, #tpu.memory_space<vmem>>, vector<16x32xf32>
      %cst_10 = arith.constant dense<0.000000e+00> : vector<16xf32>
      %12 = vector.multi_reduction <add>, %11, %cst_10 [1] : vector<16x32xf32> to vector<16xf32>
      %13 = vector.shape_cast %12 : vector<16xf32> to vector<16x1xf32>
      %cst_11 = arith.constant 3.200000e+01 : f32
      %14 = vector.broadcast %cst_11 : f32 to vector<16x1xf32>
      %15 = arith.divf %13, %14 : vector<16x1xf32>
      %16 = vector.broadcast %15 : vector<16x1xf32> to vector<16x32xf32>
      %17 = arith.subf %11, %16 : vector<16x32xf32>
      %18 = arith.mulf %17, %17 : vector<16x32xf32>
      %cst_12 = arith.constant dense<0.000000e+00> : vector<16xf32>
      %19 = vector.multi_reduction <add>, %18, %cst_12 [1] : vector<16x32xf32> to vector<16xf32>
      %20 = vector.shape_cast %19 : vector<16xf32> to vector<16x1xf32>
      %cst_13 = arith.constant 3.200000e+01 : f32
      %21 = vector.broadcast %cst_13 : f32 to vector<16x1xf32>
      %22 = arith.divf %20, %21 : vector<16x1xf32>
      %cst_14 = arith.constant 9.99999974E-6 : f32
      %23 = vector.broadcast %cst_14 : f32 to vector<16x1xf32>
      %24 = arith.addf %22, %23 : vector<16x1xf32>
      %25 = math.rsqrt %24 : vector<16x1xf32>
      %26 = vector.broadcast %25 : vector<16x1xf32> to vector<16x32xf32>
      %27 = arith.mulf %17, %26 : vector<16x32xf32>
      %c0_15 = arith.constant 0 : index
      %c0_16 = arith.constant 0 : index
      %28 = vector.load %arg3[%c0_15, %c0_16] : memref<1x32xf32, #tpu.memory_space<vmem>>, vector<1x32xf32>
      %29 = vector.broadcast %28 : vector<1x32xf32> to vector<16x32xf32>
      %30 = arith.mulf %27, %29 : vector<16x32xf32>
      %c0_17 = arith.constant 0 : index
      %c0_18 = arith.constant 0 : index
      %31 = vector.load %arg4[%c0_17, %c0_18] : memref<1x32xf32, #tpu.memory_space<vmem>>, vector<1x32xf32>
      %32 = vector.broadcast %31 : vector<1x32xf32> to vector<16x32xf32>
      %33 = arith.addf %30, %32 : vector<16x32xf32>
      %34 = arith.truncf %33 : vector<16x32xf32> to vector<16x32xbf16>
      %c0_19 = arith.constant 0 : index
      %c0_20 = arith.constant 0 : index
      %35 = vector.load %arg8[%c0_19, %c0_20] : memref<16x32xbf16, #tpu.memory_space<vmem>>, vector<16x32xbf16>
      tpu.vector_store %arg8[%c0_19, %c0_20], %34 {strides = array<i32>} : memref<16x32xbf16, #tpu.memory_space<vmem>>, vector<16x32xbf16>,
    } else {
    }
    %c0 = arith.constant 0 : index
    %c0_1 = arith.constant 0 : index
    %3 = vector.load %arg8[%c0, %c0_1] : memref<16x32xbf16, #tpu.memory_space<vmem>>, vector<16x32xbf16>
    %c0_2 = arith.constant 0 : index
    %c0_3 = arith.constant 0 : index
    %4 = vector.load %arg5[%c0_2, %c0_3] : memref<32x96xbf16, #tpu.memory_space<vmem>>, vector<32x96xbf16>
    %cst = arith.constant dense<0.000000e+00> : vector<16x96xf32>
    %5 = tpu.matmul %3, %4, %cst {dimension_numbers = #tpu.dot_dimension_numbers<[1], [0], [0], [1], [0, 0, 1, 1], [], []>} : vector<16x32xbf16>, vector<32x96xbf16>, vector<16x96xf32> -> vector<16x96xf32>
    %c0_4 = arith.constant 0 : index
    %c0_5 = arith.constant 0 : index
    %6 = vector.load %arg6[%c0_4, %c0_5] : memref<1x96xf32, #tpu.memory_space<vmem>>, vector<1x96xf32>
    %7 = vector.broadcast %6 : vector<1x96xf32> to vector<16x96xf32>
    %8 = arith.addf %5, %7 : vector<16x96xf32>
    %9 = arith.truncf %8 : vector<16x96xf32> to vector<16x96xbf16>
    %c0_6 = arith.constant 0 : index
    %c0_7 = arith.constant 0 : index
    %10 = vector.load %arg7[%c0_6, %c0_7] : memref<16x96xbf16, #tpu.memory_space<vmem>>, vector<16x96xbf16>
    tpu.vector_store %arg7[%c0_6, %c0_7], %9 {strides = array<i32>} : memref<16x96xbf16, #tpu.memory_space<vmem>>, vector<16x96xbf16>,
    return
  }
  func.func @transform_0(%arg0: i32, %arg1: i32) -> (i32, i32) {
    %c0_i32 = arith.constant 0 : i32
    %c0_i32_0 = arith.constant 0 : i32
    return %arg0, %c0_i32 : i32, i32
  }
  func.func @transform_1(%arg0: i32, %arg1: i32) -> (i32, i32) {
    %c0_i32 = arith.constant 0 : i32
    %c0_i32_0 = arith.constant 0 : i32
    %c0_i32_1 = arith.constant 0 : i32
    return %c0_i32, %c0_i32_0 : i32, i32
  }
  func.func @transform_2(%arg0: i32, %arg1: i32) -> (i32, i32) {
    %c0_i32 = arith.constant 0 : i32
    %c0_i32_0 = arith.constant 0 : i32
    %c0_i32_1 = arith.constant 0 : i32
    return %c0_i32, %c0_i32_0 : i32, i32
  }
  func.func @transform_3(%arg0: i32, %arg1: i32) -> (i32, i32) {
    %c0_i32 = arith.constant 0 : i32
    %c0_i32_0 = arith.constant 0 : i32
    return %c0_i32, %arg1 : i32, i32
  }
  func.func @transform_4(%arg0: i32, %arg1: i32) -> (i32, i32) {
    %c0_i32 = arith.constant 0 : i32
    %c0_i32_0 = arith.constant 0 : i32
    return %c0_i32, %arg1 : i32, i32
  }
  func.func @transform_5(%arg0: i32, %arg1: i32) -> (i32, i32) {
    %c0_i32 = arith.constant 0 : i32
    return %arg0, %arg1 : i32, i32
  }
}

module attributes {stable_mosaic.version = 11 : i64} {
  func.func @_ln_linear_kernel(%arg0: i32, %arg1: i32, %arg2: memref<16x32xf32, #tpu.memory_space<vmem>>, %arg3: memref<1x32xf32, #tpu.memory_space<vmem>>, %arg4: memref<1x32xf32, #tpu.memory_space<vmem>>, %arg5: memref<32x128xbf16, #tpu.memory_space<vmem>>, %arg6: memref<1x128xf32, #tpu.memory_space<vmem>>, %arg7: memref<16x128xbf16, #tpu.memory_space<vmem>>, %arg8: memref<16x32xbf16, #tpu.memory_space<vmem>>) attributes {dimension_semantics = [#tpu.dimension_semantics<parallel>, #tpu.dimension_semantics<arbitrary>], iteration_bounds = array<i64: 1, 1>, scalar_prefetch = 0 : i64, scratch_operands = 1 : i64, tpu.core_type = #tpu.core_type<tc>, window_params = [{transform_indices = @transform_0, window_bounds = array<i64: 16, 32>}, {pipeline_mode = #tpu.pipeline_mode<synchronous>, transform_indices = @transform_1, window_bounds = array<i64: 1, 32>}, {pipeline_mode = #tpu.pipeline_mode<synchronous>, transform_indices = @transform_2, window_bounds = array<i64: 1, 32>}, {transform_indices = @transform_3, window_bounds = array<i64: 32, 128>}, {transform_indices = @transform_4, window_bounds = array<i64: 1, 128>}, {transform_indices = @transform_5, window_bounds = array<i64: 16, 128>}]} {
    %c0_i32 = arith.constant 0 : i32
    %0 = arith.cmpi eq, %arg1, %c0_i32 : i32
    %1 = arith.extui %0 : i1 to i32
    %c0_i32_0 = arith.constant 0 : i32
    %2 = arith.cmpi ne, %1, %c0_i32_0 : i32
    scf.if %2 {
      %c0_10 = arith.constant 0 : index
      %c0_11 = arith.constant 0 : index
      %19 = vector.load %arg2[%c0_10, %c0_11] : memref<16x32xf32, #tpu.memory_space<vmem>>, vector<16x32xf32>
      %cst_12 = arith.constant dense<0.000000e+00> : vector<16xf32>
      %20 = vector.multi_reduction <add>, %19, %cst_12 [1] : vector<16x32xf32> to vector<16xf32>
      %21 = vector.shape_cast %20 : vector<16xf32> to vector<16x1xf32>
      %cst_13 = arith.constant 3.200000e+01 : f32
      %22 = vector.broadcast %cst_13 : f32 to vector<16x1xf32>
      %23 = arith.divf %21, %22 : vector<16x1xf32>
      %24 = vector.broadcast %23 : vector<16x1xf32> to vector<16x32xf32>
      %25 = arith.subf %19, %24 : vector<16x32xf32>
      %26 = arith.mulf %25, %25 : vector<16x32xf32>
      %cst_14 = arith.constant dense<0.000000e+00> : vector<16xf32>
      %27 = vector.multi_reduction <add>, %26, %cst_14 [1] : vector<16x32xf32> to vector<16xf32>
      %28 = vector.shape_cast %27 : vector<16xf32> to vector<16x1xf32>
      %cst_15 = arith.constant 3.200000e+01 : f32
      %29 = vector.broadcast %cst_15 : f32 to vector<16x1xf32>
      %30 = arith.divf %28, %29 : vector<16x1xf32>
      %cst_16 = arith.constant 9.99999974E-6 : f32
      %31 = vector.broadcast %cst_16 : f32 to vector<16x1xf32>
      %32 = arith.addf %30, %31 : vector<16x1xf32>
      %33 = math.rsqrt %32 : vector<16x1xf32>
      %34 = vector.broadcast %33 : vector<16x1xf32> to vector<16x32xf32>
      %35 = arith.mulf %25, %34 : vector<16x32xf32>
      %c0_17 = arith.constant 0 : index
      %c0_18 = arith.constant 0 : index
      %36 = vector.load %arg3[%c0_17, %c0_18] : memref<1x32xf32, #tpu.memory_space<vmem>>, vector<1x32xf32>
      %37 = vector.broadcast %36 : vector<1x32xf32> to vector<16x32xf32>
      %38 = arith.mulf %35, %37 : vector<16x32xf32>
      %c0_19 = arith.constant 0 : index
      %c0_20 = arith.constant 0 : index
      %39 = vector.load %arg4[%c0_19, %c0_20] : memref<1x32xf32, #tpu.memory_space<vmem>>, vector<1x32xf32>
      %40 = vector.broadcast %39 : vector<1x32xf32> to vector<16x32xf32>
      %41 = arith.addf %38, %40 : vector<16x32xf32>
      %42 = arith.truncf %41 : vector<16x32xf32> to vector<16x32xbf16>
      %c0_21 = arith.constant 0 : index
      %c0_22 = arith.constant 0 : index
      %43 = vector.load %arg8[%c0_21, %c0_22] : memref<16x32xbf16, #tpu.memory_space<vmem>>, vector<16x32xbf16>
      tpu.vector_store %arg8[%c0_21, %c0_22], %42 {strides = array<i32>} : memref<16x32xbf16, #tpu.memory_space<vmem>>, vector<16x32xbf16>,
    } else {
    }
    %c0 = arith.constant 0 : index
    %c0_1 = arith.constant 0 : index
    %3 = vector.load %arg8[%c0, %c0_1] : memref<16x32xbf16, #tpu.memory_space<vmem>>, vector<16x32xbf16>
    %c0_2 = arith.constant 0 : index
    %c0_3 = arith.constant 0 : index
    %4 = vector.load %arg5[%c0_2, %c0_3] : memref<32x128xbf16, #tpu.memory_space<vmem>>, vector<32x128xbf16>
    %cst = arith.constant dense<0.000000e+00> : vector<16x128xf32>
    %5 = tpu.matmul %3, %4, %cst {dimension_numbers = #tpu.dot_dimension_numbers<[1], [0], [0], [1], [0, 0, 1, 1], [], []>} : vector<16x32xbf16>, vector<32x128xbf16>, vector<16x128xf32> -> vector<16x128xf32>
    %c0_4 = arith.constant 0 : index
    %c0_5 = arith.constant 0 : index
    %6 = vector.load %arg6[%c0_4, %c0_5] : memref<1x128xf32, #tpu.memory_space<vmem>>, vector<1x128xf32>
    %7 = vector.broadcast %6 : vector<1x128xf32> to vector<16x128xf32>
    %8 = arith.addf %5, %7 : vector<16x128xf32>
    %cst_6 = arith.constant 1.702000e+00 : f32
    %9 = vector.broadcast %cst_6 : f32 to vector<16x128xf32>
    %10 = arith.mulf %9, %8 : vector<16x128xf32>
    %11 = arith.negf %10 : vector<16x128xf32>
    %12 = math.exp %11 : vector<16x128xf32>
    %cst_7 = arith.constant 1.000000e+00 : f32
    %13 = vector.broadcast %cst_7 : f32 to vector<16x128xf32>
    %14 = arith.addf %13, %12 : vector<16x128xf32>
    %15 = arith.divf %13, %14 : vector<16x128xf32>
    %16 = arith.mulf %8, %15 : vector<16x128xf32>
    %17 = arith.truncf %16 : vector<16x128xf32> to vector<16x128xbf16>
    %c0_8 = arith.constant 0 : index
    %c0_9 = arith.constant 0 : index
    %18 = vector.load %arg7[%c0_8, %c0_9] : memref<16x128xbf16, #tpu.memory_space<vmem>>, vector<16x128xbf16>
    tpu.vector_store %arg7[%c0_8, %c0_9], %17 {strides = array<i32>} : memref<16x128xbf16, #tpu.memory_space<vmem>>, vector<16x128xbf16>,
    return
  }
  func.func @transform_0(%arg0: i32, %arg1: i32) -> (i32, i32) {
    %c0_i32 = arith.constant 0 : i32
    %c0_i32_0 = arith.constant 0 : i32
    return %arg0, %c0_i32 : i32, i32
  }
  func.func @transform_1(%arg0: i32, %arg1: i32) -> (i32, i32) {
    %c0_i32 = arith.constant 0 : i32
    %c0_i32_0 = arith.constant 0 : i32
    %c0_i32_1 = arith.constant 0 : i32
    return %c0_i32, %c0_i32_0 : i32, i32
  }
  func.func @transform_2(%arg0: i32, %arg1: i32) -> (i32, i32) {
    %c0_i32 = arith.constant 0 : i32
    %c0_i32_0 = arith.constant 0 : i32
    %c0_i32_1 = arith.constant 0 : i32
    return %c0_i32, %c0_i32_0 : i32, i32
  }
  func.func @transform_3(%arg0: i32, %arg1: i32) -> (i32, i32) {
    %c0_i32 = arith.constant 0 : i32
    %c0_i32_0 = arith.constant 0 : i32
    return %c0_i32, %arg1 : i32, i32
  }
  func.func @transform_4(%arg0: i32, %arg1: i32) -> (i32, i32) {
    %c0_i32 = arith.constant 0 : i32
    %c0_i32_0 = arith.constant 0 : i32
    return %c0_i32, %arg1 : i32, i32
  }
  func.func @transform_5(%arg0: i32, %arg1: i32) -> (i32, i32) {
    %c0_i32 = arith.constant 0 : i32
    return %arg0, %arg1 : i32, i32
  }
}

module attributes {stable_mosaic.version = 11 : i64} {
  func.func @_linear_kernel(%arg0: i32, %arg1: i32, %arg2: i32, %arg3: memref<16x32xbf16, #tpu.memory_space<vmem>>, %arg4: memref<32x32xbf16, #tpu.memory_space<vmem>>, %arg5: memref<1x32xf32, #tpu.memory_space<vmem>>, %arg6: memref<16x32xf32, #tpu.memory_space<vmem>>, %arg7: memref<16x32xf32, #tpu.memory_space<vmem>>, %arg8: memref<16x32xf32, #tpu.memory_space<vmem>>) attributes {dimension_semantics = [#tpu.dimension_semantics<parallel>, #tpu.dimension_semantics<parallel>, #tpu.dimension_semantics<arbitrary>], iteration_bounds = array<i64: 1, 1, 1>, scalar_prefetch = 0 : i64, scratch_operands = 1 : i64, tpu.core_type = #tpu.core_type<tc>, window_params = [{transform_indices = @transform_0, window_bounds = array<i64: 16, 32>}, {transform_indices = @transform_1, window_bounds = array<i64: 32, 32>}, {transform_indices = @transform_2, window_bounds = array<i64: 1, 32>}, {transform_indices = @transform_3, window_bounds = array<i64: 16, 32>}, {transform_indices = @transform_4, window_bounds = array<i64: 16, 32>}]} {
    %c0_i32 = arith.constant 0 : i32
    %0 = arith.cmpi eq, %arg2, %c0_i32 : i32
    %1 = arith.extui %0 : i1 to i32
    %c0_i32_0 = arith.constant 0 : i32
    %2 = arith.cmpi ne, %1, %c0_i32_0 : i32
    scf.if %2 {
      %cst_10 = arith.constant 0.000000e+00 : f32
      %12 = vector.broadcast %cst_10 : f32 to vector<16x32xf32>
      %c0_11 = arith.constant 0 : index
      %c0_12 = arith.constant 0 : index
      %13 = vector.load %arg8[%c0_11, %c0_12] : memref<16x32xf32, #tpu.memory_space<vmem>>, vector<16x32xf32>
      tpu.vector_store %arg8[%c0_11, %c0_12], %12 {strides = array<i32>} : memref<16x32xf32, #tpu.memory_space<vmem>>, vector<16x32xf32>,
    } else {
    }
    %c0 = arith.constant 0 : index
    %c0_1 = arith.constant 0 : index
    %3 = vector.load %arg8[%c0, %c0_1] : memref<16x32xf32, #tpu.memory_space<vmem>>, vector<16x32xf32>
    %c0_2 = arith.constant 0 : index
    %c0_3 = arith.constant 0 : index
    %4 = vector.load %arg3[%c0_2, %c0_3] : memref<16x32xbf16, #tpu.memory_space<vmem>>, vector<16x32xbf16>
    %c0_4 = arith.constant 0 : index
    %c0_5 = arith.constant 0 : index
    %5 = vector.load %arg4[%c0_4, %c0_5] : memref<32x32xbf16, #tpu.memory_space<vmem>>, vector<32x32xbf16>
    %cst = arith.constant dense<0.000000e+00> : vector<16x32xf32>
    %6 = tpu.matmul %4, %5, %cst {dimension_numbers = #tpu.dot_dimension_numbers<[1], [0], [0], [1], [0, 0, 1, 1], [], []>} : vector<16x32xbf16>, vector<32x32xbf16>, vector<16x32xf32> -> vector<16x32xf32>
    %7 = arith.addf %3, %6 : vector<16x32xf32>
    %c0_6 = arith.constant 0 : index
    %c0_7 = arith.constant 0 : index
    %8 = vector.load %arg8[%c0_6, %c0_7] : memref<16x32xf32, #tpu.memory_space<vmem>>, vector<16x32xf32>
    tpu.vector_store %arg8[%c0_6, %c0_7], %7 {strides = array<i32>} : memref<16x32xf32, #tpu.memory_space<vmem>>, vector<16x32xf32>,
    %c0_i32_8 = arith.constant 0 : i32
    %9 = arith.cmpi eq, %arg2, %c0_i32_8 : i32
    %10 = arith.extui %9 : i1 to i32
    %c0_i32_9 = arith.constant 0 : i32
    %11 = arith.cmpi ne, %10, %c0_i32_9 : i32
    scf.if %11 {
      %c0_10 = arith.constant 0 : index
      %c0_11 = arith.constant 0 : index
      %12 = vector.load %arg8[%c0_10, %c0_11] : memref<16x32xf32, #tpu.memory_space<vmem>>, vector<16x32xf32>
      %c0_12 = arith.constant 0 : index
      %c0_13 = arith.constant 0 : index
      %13 = vector.load %arg5[%c0_12, %c0_13] : memref<1x32xf32, #tpu.memory_space<vmem>>, vector<1x32xf32>
      %14 = vector.broadcast %13 : vector<1x32xf32> to vector<16x32xf32>
      %15 = arith.addf %12, %14 : vector<16x32xf32>
      %c0_14 = arith.constant 0 : index
      %c0_15 = arith.constant 0 : index
      %16 = vector.load %arg6[%c0_14, %c0_15] : memref<16x32xf32, #tpu.memory_space<vmem>>, vector<16x32xf32>
      %17 = arith.addf %15, %16 : vector<16x32xf32>
      %c0_16 = arith.constant 0 : index
      %c0_17 = arith.constant 0 : index
      %18 = vector.load %arg7[%c0_16, %c0_17] : memref<16x32xf32, #tpu.memory_space<vmem>>, vector<16x32xf32>
      tpu.vector_store %arg7[%c0_16, %c0_17], %17 {strides = array<i32>} : memref<16x32xf32, #tpu.memory_space<vmem>>, vector<16x32xf32>,
    } else {
    }
    return
  }
  func.func @transform_0(%arg0: i32, %arg1: i32, %arg2: i32) -> (i32, i32) {
    %c0_i32 = arith.constant 0 : i32
    return %arg0, %arg2 : i32, i32
  }
  func.func @transform_1(%arg0: i32, %arg1: i32, %arg2: i32) -> (i32, i32) {
    %c0_i32 = arith.constant 0 : i32
    return %arg2, %arg1 : i32, i32
  }
  func.func @transform_2(%arg0: i32, %arg1: i32, %arg2: i32) -> (i32, i32) {
    %c0_i32 = arith.constant 0 : i32
    %c0_i32_0 = arith.constant 0 : i32
    return %c0_i32, %arg1 : i32, i32
  }
  func.func @transform_3(%arg0: i32, %arg1: i32, %arg2: i32) -> (i32, i32) {
    %c0_i32 = arith.constant 0 : i32
    return %arg0, %arg1 : i32, i32
  }
  func.func @transform_4(%arg0: i32, %arg1: i32, %arg2: i32) -> (i32, i32) {
    %c0_i32 = arith.constant 0 : i32
    return %arg0, %arg1 : i32, i32
  }
}

module attributes {stable_mosaic.version = 11 : i64} {
  func.func @_ln_kernel(%arg0: i32, %arg1: memref<16x32xf32, #tpu.memory_space<vmem>>, %arg2: memref<1x32xf32, #tpu.memory_space<vmem>>, %arg3: memref<1x32xf32, #tpu.memory_space<vmem>>, %arg4: memref<16x32xf32, #tpu.memory_space<vmem>>) attributes {dimension_semantics = [#tpu.dimension_semantics<parallel>], iteration_bounds = array<i64: 1>, scalar_prefetch = 0 : i64, scratch_operands = 0 : i64, tpu.core_type = #tpu.core_type<tc>, window_params = [{transform_indices = @transform_0, window_bounds = array<i64: 16, 32>}, {pipeline_mode = #tpu.pipeline_mode<synchronous>, transform_indices = @transform_1, window_bounds = array<i64: 1, 32>}, {pipeline_mode = #tpu.pipeline_mode<synchronous>, transform_indices = @transform_2, window_bounds = array<i64: 1, 32>}, {transform_indices = @transform_3, window_bounds = array<i64: 16, 32>}]} {
    %c0 = arith.constant 0 : index
    %c0_0 = arith.constant 0 : index
    %0 = vector.load %arg1[%c0, %c0_0] : memref<16x32xf32, #tpu.memory_space<vmem>>, vector<16x32xf32>
    %cst = arith.constant dense<0.000000e+00> : vector<16xf32>
    %1 = vector.multi_reduction <add>, %0, %cst [1] : vector<16x32xf32> to vector<16xf32>
    %2 = vector.shape_cast %1 : vector<16xf32> to vector<16x1xf32>
    %cst_1 = arith.constant 3.200000e+01 : f32
    %3 = vector.broadcast %cst_1 : f32 to vector<16x1xf32>
    %4 = arith.divf %2, %3 : vector<16x1xf32>
    %5 = vector.broadcast %4 : vector<16x1xf32> to vector<16x32xf32>
    %6 = arith.subf %0, %5 : vector<16x32xf32>
    %7 = arith.mulf %6, %6 : vector<16x32xf32>
    %cst_2 = arith.constant dense<0.000000e+00> : vector<16xf32>
    %8 = vector.multi_reduction <add>, %7, %cst_2 [1] : vector<16x32xf32> to vector<16xf32>
    %9 = vector.shape_cast %8 : vector<16xf32> to vector<16x1xf32>
    %cst_3 = arith.constant 3.200000e+01 : f32
    %10 = vector.broadcast %cst_3 : f32 to vector<16x1xf32>
    %11 = arith.divf %9, %10 : vector<16x1xf32>
    %cst_4 = arith.constant 9.99999974E-6 : f32
    %12 = vector.broadcast %cst_4 : f32 to vector<16x1xf32>
    %13 = arith.addf %11, %12 : vector<16x1xf32>
    %14 = math.rsqrt %13 : vector<16x1xf32>
    %15 = vector.broadcast %14 : vector<16x1xf32> to vector<16x32xf32>
    %16 = arith.mulf %6, %15 : vector<16x32xf32>
    %c0_5 = arith.constant 0 : index
    %c0_6 = arith.constant 0 : index
    %17 = vector.load %arg2[%c0_5, %c0_6] : memref<1x32xf32, #tpu.memory_space<vmem>>, vector<1x32xf32>
    %18 = vector.broadcast %17 : vector<1x32xf32> to vector<16x32xf32>
    %19 = arith.mulf %16, %18 : vector<16x32xf32>
    %c0_7 = arith.constant 0 : index
    %c0_8 = arith.constant 0 : index
    %20 = vector.load %arg3[%c0_7, %c0_8] : memref<1x32xf32, #tpu.memory_space<vmem>>, vector<1x32xf32>
    %21 = vector.broadcast %20 : vector<1x32xf32> to vector<16x32xf32>
    %22 = arith.addf %19, %21 : vector<16x32xf32>
    %c0_9 = arith.constant 0 : index
    %c0_10 = arith.constant 0 : index
    %23 = vector.load %arg4[%c0_9, %c0_10] : memref<16x32xf32, #tpu.memory_space<vmem>>, vector<16x32xf32>
    tpu.vector_store %arg4[%c0_9, %c0_10], %22 {strides = array<i32>} : memref<16x32xf32, #tpu.memory_space<vmem>>, vector<16x32xf32>,
    return
  }
  func.func @transform_0(%arg0: i32) -> (i32, i32) {
    %c0_i32 = arith.constant 0 : i32
    %c0_i32_0 = arith.constant 0 : i32
    return %arg0, %c0_i32 : i32, i32
  }
  func.func @transform_1(%arg0: i32) -> (i32, i32) {
    %c0_i32 = arith.constant 0 : i32
    %c0_i32_0 = arith.constant 0 : i32
    %c0_i32_1 = arith.constant 0 : i32
    return %c0_i32, %c0_i32_0 : i32, i32
  }
  func.func @transform_2(%arg0: i32) -> (i32, i32) {
    %c0_i32 = arith.constant 0 : i32
    %c0_i32_0 = arith.constant 0 : i32
    %c0_i32_1 = arith.constant 0 : i32
    return %c0_i32, %c0_i32_0 : i32, i32
  }
  func.func @transform_3(%arg0: i32) -> (i32, i32) {
    %c0_i32 = arith.constant 0 : i32
    %c0_i32_0 = arith.constant 0 : i32
    return %arg0, %c0_i32 : i32, i32
  }
}

</mosaic_0001>

<bundles_post_ra>
// kernel: text_encoder_forward.11
= control target key start
LH: loop header
LB: loop body
LE: loop exit
PB: predicated region body
PF: predicated region fallthrough
CT: control target
= control target key end

     0   :  { %10 = vsyncpa [#allocation4], 0  ;;  %s364_s0 = inlined_call_operand.vmem [shape: f32[16,32], index: 0, kind: input, shape index: {}]   ;;  %s365_s1 = inlined_call_operand.hbm [shape: f32[1,32], index: 1, kind: input, shape index: {}]   ;;  %s366_s2 = inlined_call_operand.hbm [shape: f32[1,32], index: 2, kind: input, shape index: {}]   ;;  %s367_s3 = inlined_call_operand.vmem [shape: bf16[32,96], index: 3, kind: input, shape index: {}]   ;;  %s368_s4 = inlined_call_operand.hbm [shape: f32[1,96], index: 4, kind: input, shape index: {}]   ;;  %s369_s5 = inlined_call_operand.vmem [shape: bf16[16,96], index: 5, kind: output, shape index: {}]  }
   0x1   :  { %11 = vsyncpa [#allocation6], 0  ;;  %s30_s20 = sshll.u32 %s366_s2, 4  ;;  %s298_s21 = smov [#allocation5]   ;;  %s31_s20 = int_to_ptr.hbm [resolvable:$true] %s30_s20 }
   0x2   :  { %s32_s22 = sshll.u32 %s298_s21, 4  ;;  %s19_s25 = sshll.u32 %s365_s1, 4  ;;  %s33_s22 = int_to_ptr.vmem [resolvable:$true] %s32_s22  ;;  %s20_s25 = int_to_ptr.hbm [resolvable:$true] %s19_s25 }
   0x3   :  { %35 = dma.hbm_to_vmem [thread:$0]  %s31_s20, 16, %s33_s22, [#allocation6]  }
   0x4   :  { %s299_s26 = smov [#allocation3]   ;;  %s43_s30 = sshll.u32 %s368_s4, 4  ;;  %s44_s30 = int_to_ptr.hbm [resolvable:$true] %s43_s30 }
   0x5   :  { %s21_s27 = sshll.u32 %s299_s26, 4  ;;  %s300_s2 = smov [#allocation7]   ;;  %s22_s27 = int_to_ptr.vmem [resolvable:$true] %s21_s27 }
   0x6   :  { %24 = dma.hbm_to_vmem [thread:$0]  %s20_s25, 16, %s22_s27, [#allocation4]  }
   0x7   :  { %s45_s6 = sshll.u32 %s300_s2, 4  ;;  %s46_s6 = int_to_ptr.vmem [resolvable:$true] %s45_s6 }
   0x8   :  { %48 = dma.hbm_to_vmem [thread:$0]  %s44_s30, 16, %s46_s6, [#allocation6]  }
   0x9   :  { %294 = dma.done.wait [#allocation4], 16  }
   0xa   :  { %295 = vsyncadd [#allocation4], 4294967280 }
   0xb   :  { %296 = dma.done.wait [#allocation6], 32  }
   0xc   :  { %297 = vsyncadd [#allocation6], 4294967264  ;;  %vm68_vm0 = vcmask 261120   ;;  %v66_v0 = vld [vmem:[%s364_s0] sm:$0xff]  ;;  %v67_v2 = vld [vmem:[%s364_s0 + $0x8] sm:$0xff]  ;;  %v301_v4 = vmov 32.0  }
   0xd   :  { %v69_v1 = vsel %vm68_vm0, %v66_v0, 0.0  ;;  %v72_v3 = vsel %vm68_vm0, %v67_v2, 0.0  ;;  %216 = vrcp.f32 %v301_v4  ;;  %v208_v24 = vld [vmem:[%s367_s3 + $0x8] sm:$0xff]  ;;  %v207_v27 = vld [vmem:[%s367_s3] sm:$0xff]  ;;  %vm134_vm6 = vcmask 257024  }
   0xe   :  { %70 = vadd.xlane.f32.xlu0 %v69_v1  ;;  %174 = vmatpush.bf16.msra.mxu0 %v208_v24  ;;  %v213_v37 = vld [vmem:[#allocation3] ss:$0 sm:$0xff]  ;;  %v214_v40 = vld [vmem:[#allocation5] ss:$0 sm:$0xff]  ;;  %v215_v54 = vld [vmem:[#allocation7] ss:$0 sm:$0xff] }
   0xf   :  { %vm184_vm9 = vcmask 781312  }
  0x12   :  { %175 = vmatpush.bf16.msra.mxu0 %v207_v27 }
  0x13   :  { %v217_v5 = vpop.eup %216 }
  0x14   :  { %v76_v6 = vmul.f32 32.0, %v217_v5  ;;  %vm80_vm1 = vweird.f32 %v217_v5 }
  0x16   :  { %73 = vadd.xlane.f32.xlu0 %v72_v3  ;;  %v77_v7 = vsub.f32 1.0, %v76_v6 }
  0x18   :  { %v78_v8 = vmul.f32 %v217_v5, %v77_v7 }
  0x1a   :  { %v79_v9 = vadd.f32 %v217_v5, %v78_v8 }
  0x1c   :  { %v81_v10 = vsel %vm80_vm1, %v217_v5, %v79_v9 }
  0x81   :  { %v71_v11 = vpop.xlane.xlu0 %70 }
  0x82   :  { %v82_v12 = vmul.f32 %v81_v10, %v71_v11 }
  0x84   :  { %v84_v13 = vsub.f32 %v66_v0, %v82_v12 }
  0x86   :  { %v86_v14 = vmul.f32 %v84_v13, %v84_v13 }
  0x88   :  { %v88_v15 = vsel %vm68_vm0, %v86_v14, 0.0 }
  0x89   :  { %89 = vadd.xlane.f32.xlu1 %v88_v15  ;;  %v74_v16 = vpop.xlane.xlu0 %73 }
  0x8a   :  { %v83_v17 = vmul.f32 %v81_v10, %v74_v16 }
  0x8c   :  { %v85_v18 = vsub.f32 %v67_v2, %v83_v17 }
  0x8e   :  { %v87_v19 = vmul.f32 %v85_v18, %v85_v18 }
  0x90   :  { %v91_v20 = vsel %vm68_vm0, %v87_v19, 0.0 }
  0x91   :  { %92 = vadd.xlane.f32.xlu1 %v91_v20 }
  0xfc   :  { %v90_v21 = vpop.xlane.xlu1 %89 }
  0xfd   :  { %v94_v22 = vmul.f32 %v90_v21, %v81_v10 }
  0xff   :  { %v96_v23 = vadd.f32 1e-05, %v94_v22 }
 0x101   :  { %218 = vrsqrt.f32 %v96_v23  ;;  %vm104_vm3 = vweird.f32 %v96_v23 }
 0x104   :  { %v93_v25 = vpop.xlane.xlu1 %92 }
 0x105   :  { %v95_v26 = vmul.f32 %v93_v25, %v81_v10 }
 0x107   :  { %v219_v28 = vpop.eup %218  ;;  %v97_v29 = vadd.f32 1e-05, %v95_v26 }
 0x108   :  { %v99_v30 = vmul.f32 %v219_v28, %v96_v23  ;;  %vm105_vm2 = vweird.f32 %v219_v28 }
 0x109   :  { %220 = vrsqrt.f32 %v97_v29  ;;  %vm106_vm4 = vmor %vm104_vm3, %vm105_vm2  ;;  %vm114_vm7 = vweird.f32 %v97_v29 }
 0x10a   :  { %v100_v31 = vmul.f32 %v219_v28, %v99_v30 }
 0x10c   :  { %v101_v32 = vmul.f32 0.5, %v100_v31 }
 0x10e   :  { %v102_v33 = vsub.f32 1.5, %v101_v32 }
 0x10f   :  { %v221_v34 = vpop.eup %220 }
 0x110   :  { %v103_v35 = vmul.f32 %v219_v28, %v102_v33  ;;  %v109_v36 = vmul.f32 %v221_v34, %v97_v29  ;;  %vm115_vm5 = vweird.f32 %v221_v34 }
 0x111   :  { %vm116_vm8 = vmor %vm114_vm7, %vm115_vm5 }
 0x112   :  { %v107_v38 = vsel %vm106_vm4, %v219_v28, %v103_v35  ;;  %v110_v39 = vmul.f32 %v221_v34, %v109_v36 }
 0x113   :  { %v118_v41 = vmul.f32 %v107_v38, %v84_v13 }
 0x114   :  { %v111_v42 = vmul.f32 0.5, %v110_v39 }
 0x115   :  { %v124_v43 = vmul.f32 %v213_v37, %v118_v41 }
 0x116   :  { %v112_v44 = vsub.f32 1.5, %v111_v42 }
 0x117   :  { %v130_v45 = vadd.f32 %v214_v40, %v124_v43 }
 0x118   :  { %v113_v46 = vmul.f32 %v221_v34, %v112_v44 }
 0x119   :  { %v132_v47 = vpack.c.bf16 %v130_v45, %v130_v45 }
 0x11a   :  { %v117_v48 = vsel %vm116_vm8, %v221_v34, %v113_v46 }
 0x11b   :  { %135 = vst.msk [vmem:[#allocation2] sm:$0xf] %vm134_vm6, %v132_v47  ;;  %v119_v49 = vmul.f32 %v117_v48, %v85_v18 }
 0x11d   :  { %v125_v50 = vmul.f32 %v213_v37, %v119_v49 }
 0x11f   :  { %v131_v51 = vadd.f32 %v214_v40, %v125_v50 }
 0x121   :  { %v133_v52 = vpack.c.bf16 %v131_v51, %v131_v51 }
 0x123   :  { %136 = vst.msk [vmem:[#allocation2 + $0x4] sm:$0xf] %vm134_vm6, %v133_v52 }
 0x12a   :  { %v206_v53 = vld [vmem:[#allocation2] sm:$0xff] }
 0x12b   :  { %205 = vmatmul.msk.bf16.vlgmr.msra.gmra.mxu0 %vm68_vm0, %v206_v53 }
 0x1a8   :  { %v177_v55 = vpop.f32.mrf.mxu0 }
 0x1a9   :  { %v178_v56 = vadd.f32 %v215_v54, %v177_v55 }
 0x1ab   :  { %v182_v57 = vpack.c.bf16 %v178_v56, %v178_v56 }
 0x1ad   :  { %185 = vst.msk [vmem:[%s369_s5] sm:$0xf] %vm184_vm9, %v182_v57 }
 0x1b0   :  { %v179_v58 = vpop.f32.mrf.mxu0 }
 0x1b1   :  { %v180_v59 = vadd.f32 %v215_v54, %v179_v58 }
 0x1b3   :  { %v183_v60 = vpack.c.bf16 %v180_v59, %v180_v59 }
 0x1b5   :  { %186 = vst.msk [vmem:[%s369_s5 + $0x4] sm:$0xf] %vm184_vm9, %v183_v60 }
 0x1b6   :  { %191 = vsyncpa [#allocation4], 1 }
 0x1b7   :  { %192 = vsyncpa [#allocation6], 1 }

// kernel: text_encoder_forward.14
= control target key start
LH: loop header
LB: loop body
LE: loop exit
PB: predicated region body
PF: predicated region fallthrough
CT: control target
= control target key end

     0   :  { %10 = vsyncpa [#allocation4], 0  ;;  %s417_s0 = inlined_call_operand.vmem [shape: f32[16,32], index: 0, kind: input, shape index: {}]   ;;  %s418_s1 = inlined_call_operand.hbm [shape: f32[1,32], index: 1, kind: input, shape index: {}]   ;;  %s419_s2 = inlined_call_operand.hbm [shape: f32[1,32], index: 2, kind: input, shape index: {}]   ;;  %s420_s3 = inlined_call_operand.vmem [shape: bf16[32,128], index: 3, kind: input, shape index: {}]   ;;  %s421_s4 = inlined_call_operand.hbm [shape: f32[1,128], index: 4, kind: input, shape index: {}]   ;;  %s422_s5 = inlined_call_operand.vmem [shape: bf16[16,128], index: 5, kind: output, shape index: {}]  }
   0x1   :  { %11 = vsyncpa [#allocation6], 0  ;;  %s30_s20 = sshll.u32 %s419_s2, 4  ;;  %s354_s21 = smov [#allocation5]   ;;  %s31_s20 = int_to_ptr.hbm [resolvable:$true] %s30_s20 }
   0x2   :  { %s32_s22 = sshll.u32 %s354_s21, 4  ;;  %s19_s25 = sshll.u32 %s418_s1, 4  ;;  %s33_s22 = int_to_ptr.vmem [resolvable:$true] %s32_s22  ;;  %s20_s25 = int_to_ptr.hbm [resolvable:$true] %s19_s25 }
   0x3   :  { %35 = dma.hbm_to_vmem [thread:$0]  %s31_s20, 16, %s33_s22, [#allocation6]  }
   0x4   :  { %s355_s26 = smov [#allocation3]   ;;  %s43_s30 = sshll.u32 %s421_s4, 4  ;;  %s44_s30 = int_to_ptr.hbm [resolvable:$true] %s43_s30 }
   0x5   :  { %s21_s27 = sshll.u32 %s355_s26, 4  ;;  %s356_s2 = smov [#allocation7]   ;;  %s22_s27 = int_to_ptr.vmem [resolvable:$true] %s21_s27 }
   0x6   :  { %24 = dma.hbm_to_vmem [thread:$0]  %s20_s25, 16, %s22_s27, [#allocation4]  }
   0x7   :  { %s45_s6 = sshll.u32 %s356_s2, 4  ;;  %s46_s6 = int_to_ptr.vmem [resolvable:$true] %s45_s6 }
   0x8   :  { %48 = dma.hbm_to_vmem [thread:$0]  %s44_s30, 16, %s46_s6, [#allocation6]  }
   0x9   :  { %350 = dma.done.wait [#allocation4], 16  }
   0xa   :  { %351 = vsyncadd [#allocation4], 4294967280 }
   0xb   :  { %352 = dma.done.wait [#allocation6], 32  }
   0xc   :  { %353 = vsyncadd [#allocation6], 4294967264  ;;  %vm68_vm0 = vcmask 261120   ;;  %v66_v0 = vld [vmem:[%s417_s0] sm:$0xff]  ;;  %v67_v2 = vld [vmem:[%s417_s0 + $0x8] sm:$0xff]  ;;  %v357_v4 = vmov 32.0  }
   0xd   :  { %v69_v1 = vsel %vm68_vm0, %v66_v0, 0.0  ;;  %v72_v3 = vsel %vm68_vm0, %v67_v2, 0.0  ;;  %264 = vrcp.f32 %v357_v4  ;;  %v251_v24 = vld [vmem:[%s420_s3 + $0x8] sm:$0xff]  ;;  %v250_v27 = vld [vmem:[%s420_s3] sm:$0xff]  ;;  %vm134_vm6 = vcmask 257024  }
   0xe   :  { %70 = vadd.xlane.f32.xlu0 %v69_v1  ;;  %174 = vmatpush.bf16.msra.mxu0 %v251_v24  ;;  %v261_v37 = vld [vmem:[#allocation3] ss:$0 sm:$0xff]  ;;  %v262_v40 = vld [vmem:[#allocation5] ss:$0 sm:$0xff]  ;;  %v263_v54 = vld [vmem:[#allocation7] ss:$0 sm:$0xff] }
  0x12   :  { %175 = vmatpush.bf16.msra.mxu0 %v250_v27 }
  0x13   :  { %v265_v5 = vpop.eup %264 }
  0x14   :  { %v76_v6 = vmul.f32 32.0, %v265_v5  ;;  %vm80_vm1 = vweird.f32 %v265_v5 }
  0x16   :  { %73 = vadd.xlane.f32.xlu0 %v72_v3  ;;  %v77_v7 = vsub.f32 1.0, %v76_v6 }
  0x18   :  { %v78_v8 = vmul.f32 %v265_v5, %v77_v7 }
  0x1a   :  { %v79_v9 = vadd.f32 %v265_v5, %v78_v8 }
  0x1c   :  { %v81_v10 = vsel %vm80_vm1, %v265_v5, %v79_v9 }
  0x81   :  { %v71_v11 = vpop.xlane.xlu0 %70 }
  0x82   :  { %v82_v12 = vmul.f32 %v81_v10, %v71_v11 }
  0x84   :  { %v84_v13 = vsub.f32 %v66_v0, %v82_v12 }
  0x86   :  { %v86_v14 = vmul.f32 %v84_v13, %v84_v13 }
  0x88   :  { %v88_v15 = vsel %vm68_vm0, %v86_v14, 0.0 }
  0x89   :  { %89 = vadd.xlane.f32.xlu1 %v88_v15  ;;  %v74_v16 = vpop.xlane.xlu0 %73 }
  0x8a   :  { %v83_v17 = vmul.f32 %v81_v10, %v74_v16 }
  0x8c   :  { %v85_v18 = vsub.f32 %v67_v2, %v83_v17 }
  0x8e   :  { %v87_v19 = vmul.f32 %v85_v18, %v85_v18 }
  0x90   :  { %v91_v20 = vsel %vm68_vm0, %v87_v19, 0.0 }
  0x91   :  { %92 = vadd.xlane.f32.xlu1 %v91_v20 }
  0xfc   :  { %v90_v21 = vpop.xlane.xlu1 %89 }
  0xfd   :  { %v94_v22 = vmul.f32 %v90_v21, %v81_v10 }
  0xff   :  { %v96_v23 = vadd.f32 1e-05, %v94_v22 }
 0x101   :  { %266 = vrsqrt.f32 %v96_v23  ;;  %vm104_vm3 = vweird.f32 %v96_v23 }
 0x104   :  { %v93_v25 = vpop.xlane.xlu1 %92 }
 0x105   :  { %v95_v26 = vmul.f32 %v93_v25, %v81_v10 }
 0x107   :  { %v267_v28 = vpop.eup %266  ;;  %v97_v29 = vadd.f32 1e-05, %v95_v26 }
 0x108   :  { %v99_v30 = vmul.f32 %v267_v28, %v96_v23  ;;  %vm105_vm2 = vweird.f32 %v267_v28 }
 0x109   :  { %268 = vrsqrt.f32 %v97_v29  ;;  %vm106_vm4 = vmor %vm104_vm3, %vm105_vm2  ;;  %vm114_vm7 = vweird.f32 %v97_v29 }
 0x10a   :  { %v100_v31 = vmul.f32 %v267_v28, %v99_v30 }
 0x10c   :  { %v101_v32 = vmul.f32 0.5, %v100_v31 }
 0x10e   :  { %v102_v33 = vsub.f32 1.5, %v101_v32 }
 0x10f   :  { %v269_v34 = vpop.eup %268 }
 0x110   :  { %v103_v35 = vmul.f32 %v267_v28, %v102_v33  ;;  %v109_v36 = vmul.f32 %v269_v34, %v97_v29  ;;  %vm115_vm5 = vweird.f32 %v269_v34 }
 0x111   :  { %vm116_vm8 = vmor %vm114_vm7, %vm115_vm5 }
 0x112   :  { %v107_v38 = vsel %vm106_vm4, %v267_v28, %v103_v35  ;;  %v110_v39 = vmul.f32 %v269_v34, %v109_v36 }
 0x113   :  { %v118_v41 = vmul.f32 %v107_v38, %v84_v13 }
 0x114   :  { %v111_v42 = vmul.f32 0.5, %v110_v39 }
 0x115   :  { %v124_v43 = vmul.f32 %v261_v37, %v118_v41 }
 0x116   :  { %v112_v44 = vsub.f32 1.5, %v111_v42 }
 0x117   :  { %v130_v45 = vadd.f32 %v262_v40, %v124_v43 }
 0x118   :  { %v113_v46 = vmul.f32 %v269_v34, %v112_v44 }
 0x119   :  { %v132_v47 = vpack.c.bf16 %v130_v45, %v130_v45 }
 0x11a   :  { %v117_v48 = vsel %vm116_vm8, %v269_v34, %v113_v46 }
 0x11b   :  { %135 = vst.msk [vmem:[#allocation2] sm:$0xf] %vm134_vm6, %v132_v47  ;;  %v119_v49 = vmul.f32 %v117_v48, %v85_v18 }
 0x11d   :  { %v125_v50 = vmul.f32 %v261_v37, %v119_v49 }
 0x11f   :  { %v131_v51 = vadd.f32 %v262_v40, %v125_v50 }
 0x121   :  { %v133_v52 = vpack.c.bf16 %v131_v51, %v131_v51 }
 0x123   :  { %136 = vst.msk [vmem:[#allocation2 + $0x4] sm:$0xf] %vm134_vm6, %v133_v52 }
 0x12a   :  { %v249_v53 = vld [vmem:[#allocation2] sm:$0xff] }
 0x12b   :  { %246 = vmatmul.msk.bf16.vlgmr.msra.gmra.mxu0 %vm68_vm0, %v249_v53 }
 0x1a8   :  { %v177_v55 = vpop.f32.mrf.mxu0 }
 0x1a9   :  { %v178_v56 = vadd.f32 %v263_v54, %v177_v55 }
 0x1ab   :  { %v247_v57 = vmul.f32 -1.702, %v178_v56 }
 0x1ad   :  { %v186_v58 = vmul.f32 1.442695, %v247_v57 }
 0x1af   :  { %270 = vpow2.f32 %v186_v58 }
 0x1b0   :  { %v179_v59 = vpop.f32.mrf.mxu0 }
 0x1b1   :  { %v180_v60 = vadd.f32 %v263_v54, %v179_v59 }
 0x1b3   :  { %v248_v61 = vmul.f32 -1.702, %v180_v60 }
 0x1b5   :  { %v271_v62 = vpop.eup %270  ;;  %v188_v63 = vmul.f32 1.442695, %v248_v61 }
 0x1b6   :  { %v190_v0 = vadd.f32 1.0, %v271_v62 }
 0x1b7   :  { %272 = vpow2.f32 %v188_v63 }
 0x1b8   :  { %274 = vrcp.f32 %v190_v0  ;;  %v203_v10 = vand.u32 2147483648, %v190_v0  ;;  %vm197_vm10 = vweird.f32 %v190_v0  ;;  %v201_v11 = vand.u32 2147483647, %v190_v0 }
 0x1ba   :  { %v204_v17 = vor.u32 1.1754944e-38, %v203_v10  ;;  %vm202_vm13 = vcmp.eq.f32.partialorder %v201_v11, 8.507059e+37 }
 0x1bd   :  { %v273_v1 = vpop.eup %272 }
 0x1be   :  { %v275_v2 = vpop.eup %274  ;;  %v191_v3 = vadd.f32 1.0, %v273_v1 }
 0x1bf   :  { %v193_v4 = vmul.f32 %v275_v2, %v190_v0  ;;  %vm198_vm9 = vweird.f32 %v275_v2 }
 0x1c0   :  { %276 = vrcp.f32 %v191_v3  ;;  %vm199_vm11 = vmor %vm197_vm10, %vm198_vm9  ;;  %v218_v13 = vand.u32 2147483648, %v191_v3  ;;  %v216_v16 = vand.u32 2147483647, %v191_v3  ;;  %vm212_vm14 = vweird.f32 %v191_v3 }
 0x1c1   :  { %v194_v5 = vsub.f32 1.0, %v193_v4 }
 0x1c2   :  { %v219_v20 = vor.u32 1.1754944e-38, %v218_v13  ;;  %vm217_vm0 = vcmp.eq.f32.partialorder %v216_v16, 8.507059e+37 }
 0x1c3   :  { %v195_v6 = vmul.f32 %v275_v2, %v194_v5 }
 0x1c5   :  { %v196_v8 = vadd.f32 %v275_v2, %v195_v6 }
 0x1c6   :  { %v277_v7 = vpop.eup %276 }
 0x1c7   :  { %v208_v9 = vmul.f32 %v277_v7, %v191_v3  ;;  %v200_v14 = vsel %vm199_vm11, %v275_v2, %v196_v8  ;;  %vm213_vm12 = vweird.f32 %v277_v7 }
 0x1c8   :  { %v205_v19 = vsel %vm202_vm13, %v204_v17, %v200_v14  ;;  %vm214_vm15 = vmor %vm212_vm14, %vm213_vm12 }
 0x1c9   :  { %v209_v12 = vsub.f32 1.0, %v208_v9  ;;  %v222_v23 = vmul.f32 %v205_v19, %v178_v56 }
 0x1cb   :  { %v210_v15 = vmul.f32 %v277_v7, %v209_v12 }
 0x1cd   :  { %v211_v18 = vadd.f32 %v277_v7, %v210_v15 }
 0x1cf   :  { %v215_v21 = vsel %vm214_vm15, %v277_v7, %v211_v18 }
 0x1d0   :  { %v220_v22 = vsel %vm217_vm0, %v219_v20, %v215_v21 }
 0x1d1   :  { %v223_v24 = vmul.f32 %v220_v22, %v180_v60 }
 0x1d3   :  { %v255_v25 = vpack.c.bf16 %v223_v24, %v222_v23 }
 0x1d5   :  { %256 = vst [vmem:[%s422_s5] sm:$0xff] %v255_v25  }
 0x1d6   :  { %232 = vsyncpa [#allocation4], 1 }
 0x1d7   :  { %233 = vsyncpa [#allocation6], 1 }

// kernel: text_encoder_forward.13
= control target key start
LH: loop header
LB: loop body
LE: loop exit
PB: predicated region body
PF: predicated region fallthrough
CT: control target
= control target key end

     0   :  { %9 = vsyncpa [#allocation4], 0  ;;  %s153_s18 = smov [#allocation3]   ;;  %s211_s0 = inlined_call_operand.vmem [shape: bf16[16,32], index: 0, kind: input, shape index: {}]   ;;  %s212_s1 = inlined_call_operand.vmem [shape: bf16[32,32], index: 1, kind: input, shape index: {}]   ;;  %s213_s2 = inlined_call_operand.hbm [shape: f32[1,32], index: 2, kind: input, shape index: {}]   ;;  %s214_s3 = inlined_call_operand.vmem [shape: f32[16,32], index: 3, kind: input, shape index: {}]   ;;  %s215_s4 = inlined_call_operand.vmem [shape: f32[16,32], index: 4, kind: output, shape index: {}]  }
   0x1   :  { %s19_s17 = sshll.u32 %s213_s2, 4  ;;  %s21_s19 = sshll.u32 %s153_s18, 4  ;;  %s20_s17 = int_to_ptr.hbm [resolvable:$true] %s19_s17  ;;  %s22_s19 = int_to_ptr.vmem [resolvable:$true] %s21_s19 }
   0x2   :  { %24 = dma.hbm_to_vmem [thread:$0]  %s20_s17, 16, %s22_s19, [#allocation4]  }
   0x3   :  { %151 = dma.done.wait [#allocation4], 16  }
   0x4   :  { %152 = vsyncadd [#allocation4], 4294967280  ;;  %vm36_vm0 = vcmask 261120   ;;  %v154_v0 = vmov 0.0   ;;  %v123_v1 = vld [vmem:[%s212_s1 + $0x8] sm:$0xff]  ;;  %v122_v2 = vld [vmem:[%s212_s1] sm:$0xff] }
   0x5   :  { %37 = vst.msk [vmem:[#allocation2] sm:$0xff] %vm36_vm0, %v154_v0  ;;  %74 = vmatpush.bf16.msra.mxu0 %v123_v1  ;;  %v121_v3 = vld [vmem:[%s211_s0] sm:$0xff]  ;;  %v126_v8 = vld [vmem:[#allocation3] ss:$0 sm:$0xff]  ;;  %v98_v16 = vld [vmem:[%s214_s3 + $0x8] sm:$0xff] }
   0x6   :  { %38 = vst.msk [vmem:[#allocation2 + $0x8] sm:$0xff] %vm36_vm0, %v154_v0  ;;  %v97_v12 = vld [vmem:[%s214_s3] sm:$0xff] }
   0x9   :  { %75 = vmatpush.bf16.msra.mxu0 %v122_v2 }
   0xc   :  { %120 = vmatmul.msk.bf16.vlgmr.msra.gmra.mxu0 %vm36_vm0, %v121_v3  ;;  %v39_v4 = vld [vmem:[#allocation2] sm:$0xff] }
   0xd   :  { %v40_v7 = vld [vmem:[#allocation2 + $0x8] sm:$0xff] }
  0x89   :  { %v77_v5 = vpop.f32.mrf.mxu0 }
  0x8a   :  { %v82_v6 = vadd.f32 %v77_v5, %v39_v4 }
  0x8c   :  { %84 = vst.msk [vmem:[#allocation2] sm:$0xff] %vm36_vm0, %v82_v6 }
  0x91   :  { %v79_v9 = vpop.f32.mrf.mxu0 }
  0x92   :  { %v83_v10 = vadd.f32 %v79_v9, %v40_v7 }
  0x93   :  { %v89_v11 = vld [vmem:[#allocation2] sm:$0xff] }
  0x94   :  { %v95_v13 = vadd.f32 %v126_v8, %v89_v11  ;;  %85 = vst.msk [vmem:[#allocation2 + $0x8] sm:$0xff] %vm36_vm0, %v83_v10 }
  0x96   :  { %v99_v14 = vadd.f32 %v97_v12, %v95_v13 }
  0x98   :  { %101 = vst.msk [vmem:[%s215_s4] sm:$0xff] %vm36_vm0, %v99_v14 }
  0x9b   :  { %v90_v15 = vld [vmem:[#allocation2 + $0x8] sm:$0xff] }
  0x9c   :  { %v96_v17 = vadd.f32 %v126_v8, %v90_v15 }
  0x9e   :  { %v100_v18 = vadd.f32 %v98_v16, %v96_v17 }
  0xa0   :  { %102 = vst.msk [vmem:[%s215_s4 + $0x8] sm:$0xff] %vm36_vm0, %v100_v18 }
  0xa1   :  { %107 = vsyncpa [#allocation4], 1 }

// kernel: text_encoder_forward.12
= control target key start
LH: loop header
LB: loop body
LE: loop exit
PB: predicated region body
PF: predicated region fallthrough
CT: control target
= control target key end

     0   :  { %s534_s9 = smov 0   ;;  %s602_s0 = inlined_call_operand.vmem [shape: bf16[2,8,96], index: 0, kind: input, shape index: {}]   ;;  %s603_s1 = inlined_call_operand.vmem [shape: f32[8,8], index: 1, kind: input, shape index: {}]   ;;  %s604_s2 = inlined_call_operand.vmem [shape: bf16[2,8,32], index: 2, kind: output, shape index: {}]  }
   0x1 LB: > { %s442_s10 = sadd.s32 4294967295, %s503_s9   ;;  %p446_p0 = scmp.ge.s32.totalorder %s503_s9, 1  ;;  %s503_s9 = sphi %s534_s9, %s12_s9  }
   0x2   : > { %p111_p1 = scmp.lt.s32.totalorder %s503_s9, 3 }
   0x4   : > { %p112_p2 = pnand %p446_p0, %p111_p1 }
   0x5   : > { %p131_p3 = scmp.lt.s32.totalorder (!%p112_p2), %s442_s10, 1  ;;  %s505_s15 = smov (!%p112_p2), 96  }
   0x6   : > { %115 = sbr.rel (%p112_p2) target bundleno = 1197 (0x4ad), region = 28  ;;  %s506_s16 = smov (!%p112_p2), 88  }
   0x7   : > { %s507_s17 = smov (!%p112_p2), 120   ;;  %s508_s18 = smov (!%p112_p2), 64  }
   0x8   : > { %s509_s19 = smov (!%p112_p2), 80   ;;  %s510_s20 = smov (!%p112_p2), 72  }
   0x9   : > { %s511_s21 = smov (!%p112_p2), 112   ;;  %s512_s22 = smov (!%p112_p2), 104  }
   0xa   : > { %s513_s25 = smov (!%p112_p2), 56   ;;  %s514_s26 = smov (!%p112_p2), 40  }
   0xb   : > { %s606_s10 = smov (!%p131_p3, %s442_s10), 1  ;;  %vm147_vm0 = vcmask 64512   ;;  %v141_v8 = vld [vmem:[%s603_s1] sm:$0xff]  ;;  %vm184_vm1 = vcmask 1043456   ;;  %s515_s27 = smov 48   ;;  %vm382_vm2 = vcmask 130048  }
   0xc   : > { %s447_s11 = sshll.u32 %s606_s10, 2  ;;  %s516_s28 = smov 8   ;;  %vm384_vm3 = vcmask 195584   ;;  %vm387_vm4 = vcmask 257024  }
   0xd   : > { %s134_s14 = scalar_lea.vmem %s602_s0, %s447_s11  ;;  %s517_s29 = smov 16  }
   0xe   : > { %v140_v0 = vld [vmem:[%s134_s14] sm:$0xf]  ;;  %s518_s30 = smov 24   ;;  %s138_s5 = scalar_lea.vmem %s604_s2, %s447_s11 }
   0xf   : > { %v143_v1 = vunpack.c.l.b16 %v140_v0 }
  0x11   : > { %v550_v2 = vpack.c.b16 %v143_v1, %v143_v1 }
  0x13   : > { %145 = vrot.lane.b32.xlu0 %v550_v2, %s505_s15  ;;  %203 = vrot.lane.b32.xlu1 %v550_v2, %s506_s16 }
  0x14   : > { %201 = vrot.lane.b32.xlu2 %v550_v2, %s507_s17 }
  0x1c   : > { %179 = vrot.lane.b32.xlu2 %v550_v2, %s508_s18 }
  0x24   : > { %259 = vrot.lane.b32.xlu2 %v550_v2, %s509_s19 }
  0x2c   : > { %315 = vrot.lane.b32.xlu2 %v550_v2, %s510_s20 }
  0x34   : > { %257 = vrot.lane.b32.xlu2 %v550_v2, %s511_s21 }
  0x3c   : > { %313 = vrot.lane.b32.xlu2 %v550_v2, %s512_s22 }
  0x6e   : > { %v202_v7 = vpop.permute.xlu2 %201 }
  0x76   : > { %v180_v13 = vpop.permute.xlu2 %179 }
  0x77   : > { %v186_v18 = vsel %vm184_vm1, %v180_v13, 0 }
  0x78   : > { %195 = vmatpush.bf16.msra.mxu1 %v186_v18 }
  0x7e   : > { %v260_v14 = vpop.permute.xlu2 %259 }
  0x7f   : > { %v265_v16 = vsel %vm147_vm0, %v260_v14, 0 }
  0x80   : > { %274 = vmatpush.bf16.xpose.msrb.mxu1 %v265_v16 }
  0x85   : > { %v146_v3 = vpop.permute.xlu0 %145  ;;  %v204_v5 = vpop.permute.xlu1 %203 }
  0x86   : > { %v152_v4 = vsel %vm147_vm0, %v146_v3, 0  ;;  %v209_v6 = vsel %vm147_vm0, %v204_v5, 0  ;;  %v316_v15 = vpop.permute.xlu2 %315 }
  0x87   : > { %161 = vmatpush.bf16.xpose.msra.mxu0 %v152_v4  ;;  %218 = vmatpush.bf16.xpose.msra.mxu2 %v209_v6  ;;  %v321_v17 = vsel %vm147_vm0, %v316_v15, 0 }
  0x8e   : > { %449 = vmatmul.msk.bf16.vlgmr.msra.gmra.mxu0 %vm147_vm0, %v140_v0  ;;  %451 = vmatmul.msk.bf16.vlgmr.msra.gmra.mxu2 %vm147_vm0, %v202_v7  ;;  %v258_v19 = vpop.permute.xlu2 %257 }
  0x8f   : > { %330 = vmatpush.bf16.xpose.msrb.mxu0 %v321_v17 }
  0x96   : > { %v314_v20 = vpop.permute.xlu2 %313 }
  0x9e   : > { %455 = vmatmul.msk.bf16.vlgmr.msrb.gmra.mxu0 %vm147_vm0, %v314_v20 }
 0x10b   : > { %v163_v9 = vpop.f32.mrf.mxu0 }
 0x10c   : > { %v164_v10 = vadd.f32 %v163_v9, %v141_v8 }
 0x10e   : > { %v167_v11 = vsel %vm147_vm0, %v164_v10, -inf }
 0x10f   : > { %168 = vmax.xlane.f32.xlu0 %v167_v11 }
 0x111   : > { %v220_v21 = vpop.f32.mrf.mxu2 }
 0x112   : > { %v221_v22 = vadd.f32 %v220_v21, %v141_v8 }
 0x113   : > { %v165_v12 = vpop.f32.mrf.mxu0 }
 0x114   : > { %v224_v24 = vsel %vm147_vm0, %v221_v22, -inf }
 0x115   : > { %225 = vmax.xlane.f32.xlu2 %v224_v24 }
 0x119   : > { %v222_v27 = vpop.f32.mrf.mxu2 }
 0x11b   : > { %v332_v30 = vpop.f32.mrf.mxu0 }
 0x11c   : > { %v333_v31 = vadd.f32 %v332_v30, %v141_v8 }
 0x11e   : > { %v336_v32 = vsel %vm147_vm0, %v333_v31, -inf }
 0x123   : > { %v334_v34 = vpop.f32.mrf.mxu0 }
 0x182   : > { %v169_v23 = vpop.xlane.xlu0 %168 }
 0x183   : > { %v170_v25 = vsub.f32 %v164_v10, %v169_v23 }
 0x185   : > { %v171_v26 = vmul.f32 1.442695, %v170_v25 }
 0x187   : > { %481 = vpow2.f32 %v171_v26 }
 0x188   : > { %v226_v39 = vpop.xlane.xlu2 %225 }
 0x189   : > { %v227_v41 = vsub.f32 %v221_v22, %v226_v39 }
 0x18b   : > { %v228_v42 = vmul.f32 1.442695, %v227_v41 }
 0x18d   : > { %v482_v28 = vpop.eup %481 }
 0x18e   : > { %v173_v29 = vsel %vm147_vm0, %v482_v28, 0.0 }
 0x18f   : > { %174 = vadd.xlane.f32.xlu1 %v173_v29 }
 0x197   : > { %337 = vmax.xlane.f32.xlu1 %v336_v32 }
 0x1b0   : > { %236 = vrot.lane.b32.xlu1 %v550_v2, %s513_s25 }
 0x1b8   : > { %348 = vrot.lane.b32.xlu1 %v550_v2, %s514_s26 }
 0x202   : > { %v175_v33 = vpop.xlane.xlu1 %174 }
 0x203   : > { %483 = vrcp.f32 %v175_v33 }
 0x204   : > { %485 = vpow2.f32 %v228_v42 }
 0x209   : > { %v484_v35 = vpop.eup %483 }
 0x20a   : > { %v177_v36 = vmul.f32 %v484_v35, %v482_v28  ;;  %v338_v43 = vpop.xlane.xlu1 %337  ;;  %v486_v49 = vpop.eup %485 }
 0x20b   : > { %v339_v46 = vsub.f32 %v333_v31, %v338_v43  ;;  %v230_v51 = vsel %vm147_vm0, %v486_v49, 0.0 }
 0x20c   : > { %v178_v37 = vpack.c.bf16 %v177_v36, %v177_v36 }
 0x20d   : > { %v340_v48 = vmul.f32 1.442695, %v339_v46 }
 0x20e   : > { %450 = vmatmul.msk.bf16.vlgmr.msra.gmra.mxu1 %vm147_vm0, %v178_v37 }
 0x20f   : > { %487 = vpow2.f32 %v340_v48 }
 0x215   : > { %v488_v52 = vpop.eup %487 }
 0x216   : > { %v342_v53 = vsel %vm147_vm0, %v488_v52, 0.0 }
 0x21e   : > { %453 = vmatmul.msk.bf16.vlgmr.msrb.gmra.mxu1 %vm147_vm0, %v258_v19 }
 0x222   : > { %v237_v54 = vpop.permute.xlu1 %236 }
 0x223   : > { %v242_v55 = vsel %vm184_vm1, %v237_v54, 0 }
 0x224   : > { %251 = vmatpush.bf16.msra.mxu3 %v242_v55 }
 0x22a   : > { %v349_v56 = vpop.permute.xlu1 %348 }
 0x22b   : > { %v354_v57 = vsel %vm184_vm1, %v349_v56, 0 }
 0x22c   : > { %363 = vmatpush.bf16.msrb.mxu2 %v354_v57 }
 0x28b   : > { %v579_v38 = vpop.f32.mrf.mxu1 }
 0x293   : > { %v199_v40 = vpop.f32.mrf.mxu1 }
 0x29b   : > { %v276_v44 = vpop.f32.mrf.mxu1 }
 0x29c   : > { %v277_v45 = vadd.f32 %v276_v44, %v141_v8 }
 0x29e   : > { %v280_v47 = vsel %vm147_vm0, %v277_v45, -inf }
 0x29f   : > { %281 = vmax.xlane.f32.xlu0 %v280_v47 }
 0x2a3   : > { %v278_v50 = vpop.f32.mrf.mxu1 }
 0x2a7   : > { %231 = vadd.xlane.f32.xlu0 %v230_v51 }
 0x2af   : > { %343 = vadd.xlane.f32.xlu0 %v342_v53 }
 0x312   : > { %v282_v58 = vpop.xlane.xlu0 %281 }
 0x313   : > { %v283_v59 = vsub.f32 %v277_v45, %v282_v58 }
 0x315   : > { %v284_v60 = vmul.f32 1.442695, %v283_v59 }
 0x317   : > { %489 = vpow2.f32 %v284_v60 }
 0x31a   : > { %v232_v61 = vpop.xlane.xlu0 %231 }
 0x31b   : > { %491 = vrcp.f32 %v232_v61 }
 0x31d   : > { %v490_v62 = vpop.eup %489 }
 0x31e   : > { %v286_v63 = vsel %vm147_vm0, %v490_v62, 0.0 }
 0x31f   : > { %287 = vadd.xlane.f32.xlu0 %v286_v63 }
 0x321   : > { %v492_v0 = vpop.eup %491 }
 0x322   : > { %v344_v1 = vpop.xlane.xlu0 %343  ;;  %v234_v3 = vmul.f32 %v492_v0, %v486_v49 }
 0x323   : > { %493 = vrcp.f32 %v344_v1 }
 0x324   : > { %v235_v4 = vpack.c.bf16 %v234_v3, %v234_v3 }
 0x326   : > { %452 = vmatmul.msk.bf16.vlgmr.msra.gmra.mxu3 %vm147_vm0, %v235_v4 }
 0x329   : > { %v494_v5 = vpop.eup %493 }
 0x32a   : > { %v346_v6 = vmul.f32 %v494_v5, %v488_v52 }
 0x32c   : > { %v347_v7 = vpack.c.bf16 %v346_v6, %v346_v6 }
 0x32e   : > { %456 = vmatmul.msk.bf16.vlgmr.msrb.gmra.mxu2 %vm147_vm0, %v347_v7 }
 0x333   : > { %292 = vrot.lane.b32.xlu0 %v550_v2, %s515_s27 }
 0x392   : > { %v288_v8 = vpop.xlane.xlu0 %287 }
 0x393   : > { %495 = vrcp.f32 %v288_v8 }
 0x399   : > { %v496_v9 = vpop.eup %495 }
 0x39a   : > { %v290_v10 = vmul.f32 %v496_v9, %v490_v62 }
 0x39c   : > { %v291_v13 = vpack.c.bf16 %v290_v10, %v290_v10 }
 0x3a5   : > { %v293_v11 = vpop.permute.xlu0 %292 }
 0x3a6   : > { %v298_v12 = vsel %vm184_vm1, %v293_v11, 0 }
 0x3a7   : > { %307 = vmatpush.bf16.msrb.mxu3 %v298_v12 }
 0x3a9   : > { %v253_v14 = vpop.f32.mrf.mxu3 }
 0x3aa   : > { %454 = vmatmul.msk.bf16.vlgmr.msrb.gmra.mxu3 %vm147_vm0, %v291_v13  ;;  %370 = vrot.lane.b32.xlu2 %v253_v14, %s516_s28 }
 0x3b1   : > { %v255_v15 = vpop.f32.mrf.mxu3  ;;  %v365_v16 = vpop.f32.mrf.mxu2 }
 0x3b9   : > { %v367_v17 = vpop.f32.mrf.mxu2 }
 0x404   : > { %v371_v20 = vpop.permute.xlu2 %370 }
 0x405   : > { %v381_v21 = vsel %vm147_vm0, %v579_v38, %v371_v20 }
 0x42d   : > { %v309_v18 = vpop.f32.mrf.mxu3 }
 0x42e   : > { %374 = vrot.lane.b32.xlu1 %v309_v18, %s517_s29 }
 0x435   : > { %v311_v2 = vpop.f32.mrf.mxu3 }
 0x436   : > { %378 = vrot.lane.b32.xlu1 %v365_v16, %s518_s30 }
 0x4a0   : > { %v375_v19 = vpop.permute.xlu1 %374 }
 0x4a1   : > { %v383_v22 = vsel %vm382_vm2, %v381_v21, %v375_v19 }
 0x4a8   : > { %v379_v23 = vpop.permute.xlu1 %378 }
 0x4a9   : > { %v385_v24 = vsel %vm384_vm3, %v383_v22, %v379_v23 }
 0x4aa   : > { %v386_v25 = vpack.c.bf16 %v385_v24, %v385_v24 }
 0x4ac   : > { %388 = vst.msk [vmem:[%s138_s5] sm:$0xf] %vm387_vm4, %v386_v25 }
 0x4ad PF: > { %s12_s9 = sadd.s32 1, %s503_s9  }
 0x4ae   : > { %p9_p4 = scmp.ge.s32.totalorder %s12_s9, 4  }
 0x4b0   :  { %11 = sbr.rel (!%p9_p4) target bundleno = 1 (0x1), region = 58 }

// kernel: text_encoder_forward.15
= control target key start
LH: loop header
LB: loop body
LE: loop exit
PB: predicated region body
PF: predicated region fallthrough
CT: control target
= control target key end

     0   :  { %vm21_vm0 = vcmask 261120   ;;  %v185_v2 = vmov 0.0   ;;  %s259_s1 = inlined_call_operand.vmem [shape: bf16[128,32], index: 1, kind: input, shape index: {}]   ;;  %s260_s2 = inlined_call_operand.vmem [shape: f32[1,32], index: 2, kind: input, shape index: {}]   ;;  %s261_s0 = inlined_call_operand.vmem [shape: bf16[16,128], index: 0, kind: input, shape index: {}]   ;;  %s262_s3 = inlined_call_operand.vmem [shape: f32[16,32], index: 3, kind: input, shape index: {}]   ;;  %s263_s4 = inlined_call_operand.vmem [shape: f32[16,32], index: 4, kind: output, shape index: {}]  }
   0x1   :  { %v182_v0 = vld [vmem:[%s259_s1 + $0x38] sm:$0xff]  ;;  %v181_v1 = vld [vmem:[%s259_s1 + $0x30] sm:$0xff]  ;;  %22 = vst.msk [vmem:[#allocation2] sm:$0xff] %vm21_vm0, %v185_v2  ;;  %v180_v3 = vld [vmem:[%s259_s1 + $0x28] sm:$0xff] }
   0x2   :  { %98 = vmatpush.bf16.msra.mxu0 %v182_v0  ;;  %23 = vst.msk [vmem:[#allocation2 + $0x8] sm:$0xff] %vm21_vm0, %v185_v2  ;;  %v179_v4 = vld [vmem:[%s259_s1 + $0x20] sm:$0xff]  ;;  %v178_v5 = vld [vmem:[%s259_s1 + $0x18] sm:$0xff]  ;;  %v177_v6 = vld [vmem:[%s259_s1 + $0x10] sm:$0xff] }
   0x3   :  { %v176_v7 = vld [vmem:[%s259_s1 + $0x8] sm:$0xff]  ;;  %v175_v8 = vld [vmem:[%s259_s1] sm:$0xff] }
   0x4   :  { %v174_v9 = vld [vmem:[%s261_s0] sm:$0xff]  ;;  %v129_v21 = vld [vmem:[%s262_s3 + $0x8] sm:$0xff] }
   0x5   :  { %v184_v14 = vld [vmem:[%s260_s2] ss:$0 sm:$0xff] }
   0x6   :  { %99 = vmatpush.bf16.msra.mxu0 %v181_v1  ;;  %v128_v18 = vld [vmem:[%s262_s3] sm:$0xff] }
   0x8   :  { %v24_v10 = vld [vmem:[#allocation2] sm:$0xff] }
   0x9   :  { %v25_v13 = vld [vmem:[#allocation2 + $0x8] sm:$0xff] }
   0xa   :  { %100 = vmatpush.bf16.msra.mxu0 %v180_v3 }
   0xe   :  { %101 = vmatpush.bf16.msra.mxu0 %v179_v4 }
  0x12   :  { %102 = vmatpush.bf16.msra.mxu0 %v178_v5 }
  0x16   :  { %103 = vmatpush.bf16.msra.mxu0 %v177_v6 }
  0x1a   :  { %104 = vmatpush.bf16.msra.mxu0 %v176_v7 }
  0x1e   :  { %105 = vmatpush.bf16.msra.mxu0 %v175_v8 }
  0x21   :  { %106 = vmatmul.bf16.vlgmr.msra.gmra.mxu0 %v174_v9 }
  0x9e   :  { %v107_v11 = vpop.f32.mrf.mxu0 }
  0x9f   :  { %v112_v12 = vadd.f32 %v107_v11, %v24_v10 }
  0xa1   :  { %115 = vst.msk [vmem:[#allocation2] sm:$0xff] %vm21_vm0, %v112_v12 }
  0xa6   :  { %v109_v15 = vpop.f32.mrf.mxu0 }
  0xa7   :  { %v113_v16 = vadd.f32 %v109_v15, %v25_v13 }
  0xa8   :  { %v120_v17 = vld [vmem:[#allocation2] sm:$0xff] }
  0xa9   :  { %v126_v19 = vadd.f32 %v184_v14, %v120_v17  ;;  %116 = vst.msk [vmem:[#allocation2 + $0x8] sm:$0xff] %vm21_vm0, %v113_v16 }
  0xab   :  { %v130_v20 = vadd.f32 %v128_v18, %v126_v19 }
  0xad   :  { %132 = vst.msk [vmem:[%s263_s4] sm:$0xff] %vm21_vm0, %v130_v20 }
  0xb0   :  { %v121_v22 = vld [vmem:[#allocation2 + $0x8] sm:$0xff] }
  0xb1   :  { %v127_v23 = vadd.f32 %v184_v14, %v121_v22 }
  0xb3   :  { %v131_v24 = vadd.f32 %v129_v21, %v127_v23 }
  0xb5   :  { %133 = vst.msk [vmem:[%s263_s4 + $0x8] sm:$0xff] %vm21_vm0, %v131_v24 }

// kernel: text_encoder_forward.16
= control target key start
LH: loop header
LB: loop body
LE: loop exit
PB: predicated region body
PF: predicated region fallthrough
CT: control target
= control target key end

     0   :  { %vm27_vm0 = vcmask 261120   ;;  %v176_v4 = vmov 32.0   ;;  %vm93_vm6 = vcmask 257024   ;;  %vm143_vm9 = vcmask 781312   ;;  %s239_s0 = inlined_call_operand.vmem [shape: f32[16,32], index: 0, kind: input, shape index: {}]   ;;  %s240_s1 = inlined_call_operand.vmem [shape: f32[1,32], index: 1, kind: input, shape index: {}]   ;;  %s241_s2 = inlined_call_operand.vmem [shape: f32[1,32], index: 2, kind: input, shape index: {}]   ;;  %s242_s4 = inlined_call_operand.vmem [shape: f32[1,96], index: 4, kind: input, shape index: {}]   ;;  %s243_s3 = inlined_call_operand.vmem [shape: bf16[32,96], index: 3, kind: input, shape index: {}]   ;;  %s244_s5 = inlined_call_operand.vmem [shape: bf16[16,96], index: 5, kind: output, shape index: {}]  }
   0x1   :  { %v25_v0 = vld [vmem:[%s239_s0] sm:$0xff]  ;;  %v26_v2 = vld [vmem:[%s239_s0 + $0x8] sm:$0xff]  ;;  %170 = vrcp.f32 %v176_v4 }
   0x2   :  { %v28_v1 = vsel %vm27_vm0, %v25_v0, 0.0  ;;  %v31_v3 = vsel %vm27_vm0, %v26_v2, 0.0  ;;  %v165_v24 = vld [vmem:[%s243_s3 + $0x8] sm:$0xff]  ;;  %v164_v27 = vld [vmem:[%s243_s3] sm:$0xff] }
   0x3   :  { %29 = vadd.xlane.f32.xlu0 %v28_v1  ;;  %133 = vmatpush.bf16.msra.mxu0 %v165_v24  ;;  %v167_v37 = vld [vmem:[%s240_s1] ss:$0 sm:$0xff] }
   0x4   :  { %v168_v40 = vld [vmem:[%s241_s2] ss:$0 sm:$0xff] }
   0x5   :  { %v169_v54 = vld [vmem:[%s242_s4] ss:$0 sm:$0xff] }
   0x7   :  { %v171_v5 = vpop.eup %170  ;;  %134 = vmatpush.bf16.msra.mxu0 %v164_v27 }
   0x8   :  { %v35_v6 = vmul.f32 32.0, %v171_v5  ;;  %vm39_vm1 = vweird.f32 %v171_v5 }
   0xa   :  { %v36_v7 = vsub.f32 1.0, %v35_v6 }
   0xb   :  { %32 = vadd.xlane.f32.xlu0 %v31_v3 }
   0xc   :  { %v37_v8 = vmul.f32 %v171_v5, %v36_v7 }
   0xe   :  { %v38_v9 = vadd.f32 %v171_v5, %v37_v8 }
  0x10   :  { %v40_v10 = vsel %vm39_vm1, %v171_v5, %v38_v9 }
  0x76   :  { %v30_v11 = vpop.xlane.xlu0 %29 }
  0x77   :  { %v41_v12 = vmul.f32 %v40_v10, %v30_v11 }
  0x79   :  { %v43_v13 = vsub.f32 %v25_v0, %v41_v12 }
  0x7b   :  { %v45_v14 = vmul.f32 %v43_v13, %v43_v13 }
  0x7d   :  { %v47_v15 = vsel %vm27_vm0, %v45_v14, 0.0 }
  0x7e   :  { %48 = vadd.xlane.f32.xlu1 %v47_v15  ;;  %v33_v16 = vpop.xlane.xlu0 %32 }
  0x7f   :  { %v42_v17 = vmul.f32 %v40_v10, %v33_v16 }
  0x81   :  { %v44_v18 = vsub.f32 %v26_v2, %v42_v17 }
  0x83   :  { %v46_v19 = vmul.f32 %v44_v18, %v44_v18 }
  0x85   :  { %v50_v20 = vsel %vm27_vm0, %v46_v19, 0.0 }
  0x86   :  { %51 = vadd.xlane.f32.xlu1 %v50_v20 }
  0xf1   :  { %v49_v21 = vpop.xlane.xlu1 %48 }
  0xf2   :  { %v53_v22 = vmul.f32 %v49_v21, %v40_v10 }
  0xf4   :  { %v55_v23 = vadd.f32 1e-05, %v53_v22 }
  0xf6   :  { %172 = vrsqrt.f32 %v55_v23  ;;  %vm63_vm3 = vweird.f32 %v55_v23 }
  0xf9   :  { %v52_v25 = vpop.xlane.xlu1 %51 }
  0xfa   :  { %v54_v26 = vmul.f32 %v52_v25, %v40_v10 }
  0xfc   :  { %v173_v28 = vpop.eup %172  ;;  %v56_v29 = vadd.f32 1e-05, %v54_v26 }
  0xfd   :  { %v58_v30 = vmul.f32 %v173_v28, %v55_v23  ;;  %vm64_vm2 = vweird.f32 %v173_v28 }
  0xfe   :  { %174 = vrsqrt.f32 %v56_v29  ;;  %vm65_vm4 = vmor %vm63_vm3, %vm64_vm2  ;;  %vm73_vm7 = vweird.f32 %v56_v29 }
  0xff   :  { %v59_v31 = vmul.f32 %v173_v28, %v58_v30 }
 0x101   :  { %v60_v32 = vmul.f32 0.5, %v59_v31 }
 0x103   :  { %v61_v33 = vsub.f32 1.5, %v60_v32 }
 0x104   :  { %v175_v34 = vpop.eup %174 }
 0x105   :  { %v62_v35 = vmul.f32 %v173_v28, %v61_v33  ;;  %v68_v36 = vmul.f32 %v175_v34, %v56_v29  ;;  %vm74_vm5 = vweird.f32 %v175_v34 }
 0x106   :  { %vm75_vm8 = vmor %vm73_vm7, %vm74_vm5 }
 0x107   :  { %v66_v38 = vsel %vm65_vm4, %v173_v28, %v62_v35  ;;  %v69_v39 = vmul.f32 %v175_v34, %v68_v36 }
 0x108   :  { %v77_v41 = vmul.f32 %v66_v38, %v43_v13 }
 0x109   :  { %v70_v42 = vmul.f32 0.5, %v69_v39 }
 0x10a   :  { %v83_v43 = vmul.f32 %v167_v37, %v77_v41 }
 0x10b   :  { %v71_v44 = vsub.f32 1.5, %v70_v42 }
 0x10c   :  { %v89_v45 = vadd.f32 %v168_v40, %v83_v43 }
 0x10d   :  { %v72_v46 = vmul.f32 %v175_v34, %v71_v44 }
 0x10e   :  { %v91_v47 = vpack.c.bf16 %v89_v45, %v89_v45 }
 0x10f   :  { %v76_v48 = vsel %vm75_vm8, %v175_v34, %v72_v46 }
 0x110   :  { %94 = vst.msk [vmem:[#allocation2] sm:$0xf] %vm93_vm6, %v91_v47  ;;  %v78_v49 = vmul.f32 %v76_v48, %v44_v18 }
 0x112   :  { %v84_v50 = vmul.f32 %v167_v37, %v78_v49 }
 0x114   :  { %v90_v51 = vadd.f32 %v168_v40, %v84_v50 }
 0x116   :  { %v92_v52 = vpack.c.bf16 %v90_v51, %v90_v51 }
 0x118   :  { %95 = vst.msk [vmem:[#allocation2 + $0x4] sm:$0xf] %vm93_vm6, %v92_v52 }
 0x11f   :  { %v163_v53 = vld [vmem:[#allocation2] sm:$0xff] }
 0x120   :  { %162 = vmatmul.msk.bf16.vlgmr.msra.gmra.mxu0 %vm27_vm0, %v163_v53 }
 0x19d   :  { %v136_v55 = vpop.f32.mrf.mxu0 }
 0x19e   :  { %v137_v56 = vadd.f32 %v169_v54, %v136_v55 }
 0x1a0   :  { %v141_v57 = vpack.c.bf16 %v137_v56, %v137_v56 }
 0x1a2   :  { %144 = vst.msk [vmem:[%s244_s5] sm:$0xf] %vm143_vm9, %v141_v57 }
 0x1a5   :  { %v138_v58 = vpop.f32.mrf.mxu0 }
 0x1a6   :  { %v139_v59 = vadd.f32 %v169_v54, %v138_v58 }
 0x1a8   :  { %v142_v60 = vpack.c.bf16 %v139_v59, %v139_v59 }
 0x1aa   :  { %145 = vst.msk [vmem:[%s244_s5 + $0x4] sm:$0xf] %vm143_vm9, %v142_v60 }

// kernel: text_encoder_forward.19
= control target key start
LH: loop header
LB: loop body
LE: loop exit
PB: predicated region body
PF: predicated region fallthrough
CT: control target
= control target key end

     0   :  { %vm27_vm0 = vcmask 261120   ;;  %v232_v4 = vmov 32.0   ;;  %vm93_vm6 = vcmask 257024   ;;  %s292_s0 = inlined_call_operand.vmem [shape: f32[16,32], index: 0, kind: input, shape index: {}]   ;;  %s293_s1 = inlined_call_operand.vmem [shape: f32[1,32], index: 1, kind: input, shape index: {}]   ;;  %s294_s2 = inlined_call_operand.vmem [shape: f32[1,32], index: 2, kind: input, shape index: {}]   ;;  %s295_s4 = inlined_call_operand.vmem [shape: f32[1,128], index: 4, kind: input, shape index: {}]   ;;  %s296_s3 = inlined_call_operand.vmem [shape: bf16[32,128], index: 3, kind: input, shape index: {}]   ;;  %s297_s5 = inlined_call_operand.vmem [shape: bf16[16,128], index: 5, kind: output, shape index: {}]  }
   0x1   :  { %v25_v0 = vld [vmem:[%s292_s0] sm:$0xff]  ;;  %v26_v2 = vld [vmem:[%s292_s0 + $0x8] sm:$0xff]  ;;  %218 = vrcp.f32 %v232_v4 }
   0x2   :  { %v28_v1 = vsel %vm27_vm0, %v25_v0, 0.0  ;;  %v31_v3 = vsel %vm27_vm0, %v26_v2, 0.0  ;;  %v208_v24 = vld [vmem:[%s296_s3 + $0x8] sm:$0xff]  ;;  %v207_v27 = vld [vmem:[%s296_s3] sm:$0xff] }
   0x3   :  { %29 = vadd.xlane.f32.xlu0 %v28_v1  ;;  %133 = vmatpush.bf16.msra.mxu0 %v208_v24  ;;  %v215_v37 = vld [vmem:[%s293_s1] ss:$0 sm:$0xff] }
   0x4   :  { %v216_v40 = vld [vmem:[%s294_s2] ss:$0 sm:$0xff] }
   0x5   :  { %v217_v54 = vld [vmem:[%s295_s4] ss:$0 sm:$0xff] }
   0x7   :  { %v219_v5 = vpop.eup %218  ;;  %134 = vmatpush.bf16.msra.mxu0 %v207_v27 }
   0x8   :  { %v35_v6 = vmul.f32 32.0, %v219_v5  ;;  %vm39_vm1 = vweird.f32 %v219_v5 }
   0xa   :  { %v36_v7 = vsub.f32 1.0, %v35_v6 }
   0xb   :  { %32 = vadd.xlane.f32.xlu0 %v31_v3 }
   0xc   :  { %v37_v8 = vmul.f32 %v219_v5, %v36_v7 }
   0xe   :  { %v38_v9 = vadd.f32 %v219_v5, %v37_v8 }
  0x10   :  { %v40_v10 = vsel %vm39_vm1, %v219_v5, %v38_v9 }
  0x76   :  { %v30_v11 = vpop.xlane.xlu0 %29 }
  0x77   :  { %v41_v12 = vmul.f32 %v40_v10, %v30_v11 }
  0x79   :  { %v43_v13 = vsub.f32 %v25_v0, %v41_v12 }
  0x7b   :  { %v45_v14 = vmul.f32 %v43_v13, %v43_v13 }
  0x7d   :  { %v47_v15 = vsel %vm27_vm0, %v45_v14, 0.0 }
  0x7e   :  { %48 = vadd.xlane.f32.xlu1 %v47_v15  ;;  %v33_v16 = vpop.xlane.xlu0 %32 }
  0x7f   :  { %v42_v17 = vmul.f32 %v40_v10, %v33_v16 }
  0x81   :  { %v44_v18 = vsub.f32 %v26_v2, %v42_v17 }
  0x83   :  { %v46_v19 = vmul.f32 %v44_v18, %v44_v18 }
  0x85   :  { %v50_v20 = vsel %vm27_vm0, %v46_v19, 0.0 }
  0x86   :  { %51 = vadd.xlane.f32.xlu1 %v50_v20 }
  0xf1   :  { %v49_v21 = vpop.xlane.xlu1 %48 }
  0xf2   :  { %v53_v22 = vmul.f32 %v49_v21, %v40_v10 }
  0xf4   :  { %v55_v23 = vadd.f32 1e-05, %v53_v22 }
  0xf6   :  { %220 = vrsqrt.f32 %v55_v23  ;;  %vm63_vm3 = vweird.f32 %v55_v23 }
  0xf9   :  { %v52_v25 = vpop.xlane.xlu1 %51 }
  0xfa   :  { %v54_v26 = vmul.f32 %v52_v25, %v40_v10 }
  0xfc   :  { %v221_v28 = vpop.eup %220  ;;  %v56_v29 = vadd.f32 1e-05, %v54_v26 }
  0xfd   :  { %v58_v30 = vmul.f32 %v221_v28, %v55_v23  ;;  %vm64_vm2 = vweird.f32 %v221_v28 }
  0xfe   :  { %222 = vrsqrt.f32 %v56_v29  ;;  %vm65_vm4 = vmor %vm63_vm3, %vm64_vm2  ;;  %vm73_vm7 = vweird.f32 %v56_v29 }
  0xff   :  { %v59_v31 = vmul.f32 %v221_v28, %v58_v30 }
 0x101   :  { %v60_v32 = vmul.f32 0.5, %v59_v31 }
 0x103   :  { %v61_v33 = vsub.f32 1.5, %v60_v32 }
 0x104   :  { %v223_v34 = vpop.eup %222 }
 0x105   :  { %v62_v35 = vmul.f32 %v221_v28, %v61_v33  ;;  %v68_v36 = vmul.f32 %v223_v34, %v56_v29  ;;  %vm74_vm5 = vweird.f32 %v223_v34 }
 0x106   :  { %vm75_vm8 = vmor %vm73_vm7, %vm74_vm5 }
 0x107   :  { %v66_v38 = vsel %vm65_vm4, %v221_v28, %v62_v35  ;;  %v69_v39 = vmul.f32 %v223_v34, %v68_v36 }
 0x108   :  { %v77_v41 = vmul.f32 %v66_v38, %v43_v13 }
 0x109   :  { %v70_v42 = vmul.f32 0.5, %v69_v39 }
 0x10a   :  { %v83_v43 = vmul.f32 %v215_v37, %v77_v41 }
 0x10b   :  { %v71_v44 = vsub.f32 1.5, %v70_v42 }
 0x10c   :  { %v89_v45 = vadd.f32 %v216_v40, %v83_v43 }
 0x10d   :  { %v72_v46 = vmul.f32 %v223_v34, %v71_v44 }
 0x10e   :  { %v91_v47 = vpack.c.bf16 %v89_v45, %v89_v45 }
 0x10f   :  { %v76_v48 = vsel %vm75_vm8, %v223_v34, %v72_v46 }
 0x110   :  { %94 = vst.msk [vmem:[#allocation2] sm:$0xf] %vm93_vm6, %v91_v47  ;;  %v78_v49 = vmul.f32 %v76_v48, %v44_v18 }
 0x112   :  { %v84_v50 = vmul.f32 %v215_v37, %v78_v49 }
 0x114   :  { %v90_v51 = vadd.f32 %v216_v40, %v84_v50 }
 0x116   :  { %v92_v52 = vpack.c.bf16 %v90_v51, %v90_v51 }
 0x118   :  { %95 = vst.msk [vmem:[#allocation2 + $0x4] sm:$0xf] %vm93_vm6, %v92_v52 }
 0x11f   :  { %v206_v53 = vld [vmem:[#allocation2] sm:$0xff] }
 0x120   :  { %203 = vmatmul.msk.bf16.vlgmr.msra.gmra.mxu0 %vm27_vm0, %v206_v53 }
 0x19d   :  { %v136_v55 = vpop.f32.mrf.mxu0 }
 0x19e   :  { %v137_v56 = vadd.f32 %v217_v54, %v136_v55 }
 0x1a0   :  { %v204_v57 = vmul.f32 -1.702, %v137_v56 }
 0x1a2   :  { %v145_v58 = vmul.f32 1.442695, %v204_v57 }
 0x1a4   :  { %224 = vpow2.f32 %v145_v58 }
 0x1a5   :  { %v138_v59 = vpop.f32.mrf.mxu0 }
 0x1a6   :  { %v139_v60 = vadd.f32 %v217_v54, %v138_v59 }
 0x1a8   :  { %v205_v61 = vmul.f32 -1.702, %v139_v60 }
 0x1aa   :  { %v225_v62 = vpop.eup %224  ;;  %v147_v63 = vmul.f32 1.442695, %v205_v61 }
 0x1ab   :  { %v149_v0 = vadd.f32 1.0, %v225_v62 }
 0x1ac   :  { %226 = vpow2.f32 %v147_v63 }
 0x1ad   :  { %228 = vrcp.f32 %v149_v0  ;;  %v162_v10 = vand.u32 2147483648, %v149_v0  ;;  %vm156_vm10 = vweird.f32 %v149_v0  ;;  %v160_v11 = vand.u32 2147483647, %v149_v0 }
 0x1af   :  { %v163_v17 = vor.u32 1.1754944e-38, %v162_v10  ;;  %vm161_vm13 = vcmp.eq.f32.partialorder %v160_v11, 8.507059e+37 }
 0x1b2   :  { %v227_v1 = vpop.eup %226 }
 0x1b3   :  { %v229_v2 = vpop.eup %228  ;;  %v150_v3 = vadd.f32 1.0, %v227_v1 }
 0x1b4   :  { %v152_v4 = vmul.f32 %v229_v2, %v149_v0  ;;  %vm157_vm9 = vweird.f32 %v229_v2 }
 0x1b5   :  { %230 = vrcp.f32 %v150_v3  ;;  %vm158_vm11 = vmor %vm156_vm10, %vm157_vm9  ;;  %v177_v13 = vand.u32 2147483648, %v150_v3  ;;  %v175_v16 = vand.u32 2147483647, %v150_v3  ;;  %vm171_vm14 = vweird.f32 %v150_v3 }
 0x1b6   :  { %v153_v5 = vsub.f32 1.0, %v152_v4 }
 0x1b7   :  { %v178_v20 = vor.u32 1.1754944e-38, %v177_v13  ;;  %vm176_vm0 = vcmp.eq.f32.partialorder %v175_v16, 8.507059e+37 }
 0x1b8   :  { %v154_v6 = vmul.f32 %v229_v2, %v153_v5 }
 0x1ba   :  { %v155_v8 = vadd.f32 %v229_v2, %v154_v6 }
 0x1bb   :  { %v231_v7 = vpop.eup %230 }
 0x1bc   :  { %v167_v9 = vmul.f32 %v231_v7, %v150_v3  ;;  %v159_v14 = vsel %vm158_vm11, %v229_v2, %v155_v8  ;;  %vm172_vm12 = vweird.f32 %v231_v7 }
 0x1bd   :  { %v164_v19 = vsel %vm161_vm13, %v163_v17, %v159_v14  ;;  %vm173_vm15 = vmor %vm171_vm14, %vm172_vm12 }
 0x1be   :  { %v168_v12 = vsub.f32 1.0, %v167_v9  ;;  %v181_v23 = vmul.f32 %v164_v19, %v137_v56 }
 0x1c0   :  { %v169_v15 = vmul.f32 %v231_v7, %v168_v12 }
 0x1c2   :  { %v170_v18 = vadd.f32 %v231_v7, %v169_v15 }
 0x1c4   :  { %v174_v21 = vsel %vm173_vm15, %v231_v7, %v170_v18 }
 0x1c5   :  { %v179_v22 = vsel %vm176_vm0, %v178_v20, %v174_v21 }
 0x1c6   :  { %v182_v24 = vmul.f32 %v179_v22, %v139_v60 }
 0x1c8   :  { %v212_v25 = vpack.c.bf16 %v182_v24, %v181_v23 }
 0x1ca   :  { %213 = vst [vmem:[%s297_s5] sm:$0xff] %v212_v25  }

// kernel: text_encoder_forward.18
= control target key start
LH: loop header
LB: loop body
LE: loop exit
PB: predicated region body
PF: predicated region fallthrough
CT: control target
= control target key end

     0   :  { %vm22_vm0 = vcmask 261120   ;;  %v111_v1 = vmov 0.0   ;;  %s168_s1 = inlined_call_operand.vmem [shape: bf16[32,32], index: 1, kind: input, shape index: {}]   ;;  %s169_s2 = inlined_call_operand.vmem [shape: f32[1,32], index: 2, kind: input, shape index: {}]   ;;  %s170_s0 = inlined_call_operand.vmem [shape: bf16[16,32], index: 0, kind: input, shape index: {}]   ;;  %s171_s3 = inlined_call_operand.vmem [shape: f32[16,32], index: 3, kind: input, shape index: {}]   ;;  %s172_s4 = inlined_call_operand.vmem [shape: f32[16,32], index: 4, kind: output, shape index: {}]  }
   0x1   :  { %v108_v0 = vld [vmem:[%s168_s1 + $0x8] sm:$0xff]  ;;  %23 = vst.msk [vmem:[#allocation2] sm:$0xff] %vm22_vm0, %v111_v1  ;;  %v107_v2 = vld [vmem:[%s168_s1] sm:$0xff] }
   0x2   :  { %24 = vst.msk [vmem:[#allocation2 + $0x8] sm:$0xff] %vm22_vm0, %v111_v1  ;;  %60 = vmatpush.bf16.msra.mxu0 %v108_v0  ;;  %v106_v3 = vld [vmem:[%s170_s0] sm:$0xff]  ;;  %v84_v16 = vld [vmem:[%s171_s3 + $0x8] sm:$0xff] }
   0x3   :  { %v110_v8 = vld [vmem:[%s169_s2] ss:$0 sm:$0xff] }
   0x4   :  { %v83_v12 = vld [vmem:[%s171_s3] sm:$0xff] }
   0x6   :  { %61 = vmatpush.bf16.msra.mxu0 %v107_v2 }
   0x8   :  { %v25_v4 = vld [vmem:[#allocation2] sm:$0xff] }
   0x9   :  { %105 = vmatmul.msk.bf16.vlgmr.msra.gmra.mxu0 %vm22_vm0, %v106_v3  ;;  %v26_v7 = vld [vmem:[#allocation2 + $0x8] sm:$0xff] }
  0x86   :  { %v63_v5 = vpop.f32.mrf.mxu0 }
  0x87   :  { %v68_v6 = vadd.f32 %v63_v5, %v25_v4 }
  0x89   :  { %70 = vst.msk [vmem:[#allocation2] sm:$0xff] %vm22_vm0, %v68_v6 }
  0x8e   :  { %v65_v9 = vpop.f32.mrf.mxu0 }
  0x8f   :  { %v69_v10 = vadd.f32 %v65_v9, %v26_v7 }
  0x90   :  { %v75_v11 = vld [vmem:[#allocation2] sm:$0xff] }
  0x91   :  { %v81_v13 = vadd.f32 %v110_v8, %v75_v11  ;;  %71 = vst.msk [vmem:[#allocation2 + $0x8] sm:$0xff] %vm22_vm0, %v69_v10 }
  0x93   :  { %v85_v14 = vadd.f32 %v83_v12, %v81_v13 }
  0x95   :  { %87 = vst.msk [vmem:[%s172_s4] sm:$0xff] %vm22_vm0, %v85_v14 }
  0x98   :  { %v76_v15 = vld [vmem:[#allocation2 + $0x8] sm:$0xff] }
  0x99   :  { %v82_v17 = vadd.f32 %v110_v8, %v76_v15 }
  0x9b   :  { %v86_v18 = vadd.f32 %v84_v16, %v82_v17 }
  0x9d   :  { %88 = vst.msk [vmem:[%s172_s4 + $0x8] sm:$0xff] %vm22_vm0, %v86_v18 }

// kernel: text_encoder_forward.21
= control target key start
LH: loop header
LB: loop body
LE: loop exit
PB: predicated region body
PF: predicated region fallthrough
CT: control target
= control target key end

     0   :  { %vm16_vm0 = vcmask 261120   ;;  %v95_v4 = vmov 32.0   ;;  %s140_s0 = inlined_call_operand.vmem [shape: f32[16,32], index: 0, kind: input, shape index: {}]   ;;  %s141_s1 = inlined_call_operand.vmem [shape: f32[1,32], index: 1, kind: input, shape index: {}]   ;;  %s142_s2 = inlined_call_operand.vmem [shape: f32[1,32], index: 2, kind: input, shape index: {}]   ;;  %s143_s3 = inlined_call_operand.vmem [shape: f32[16,32], index: 3, kind: output, shape index: {}]  }
   0x1   :  { %v14_v0 = vld [vmem:[%s140_s0] sm:$0xff]  ;;  %v15_v2 = vld [vmem:[%s140_s0 + $0x8] sm:$0xff]  ;;  %89 = vrcp.f32 %v95_v4 }
   0x2   :  { %v17_v1 = vsel %vm16_vm0, %v14_v0, 0.0  ;;  %v20_v3 = vsel %vm16_vm0, %v15_v2, 0.0  ;;  %v87_v35 = vld [vmem:[%s141_s1] ss:$0 sm:$0xff] }
   0x3   :  { %18 = vadd.xlane.f32.xlu0 %v17_v1  ;;  %v88_v38 = vld [vmem:[%s142_s2] ss:$0 sm:$0xff] }
   0x7   :  { %v90_v5 = vpop.eup %89 }
   0x8   :  { %v24_v6 = vmul.f32 32.0, %v90_v5  ;;  %vm28_vm1 = vweird.f32 %v90_v5 }
   0xa   :  { %v25_v7 = vsub.f32 1.0, %v24_v6 }
   0xb   :  { %21 = vadd.xlane.f32.xlu0 %v20_v3 }
   0xc   :  { %v26_v8 = vmul.f32 %v90_v5, %v25_v7 }
   0xe   :  { %v27_v9 = vadd.f32 %v90_v5, %v26_v8 }
  0x10   :  { %v29_v10 = vsel %vm28_vm1, %v90_v5, %v27_v9 }
  0x76   :  { %v19_v11 = vpop.xlane.xlu0 %18 }
  0x77   :  { %v30_v12 = vmul.f32 %v29_v10, %v19_v11 }
  0x79   :  { %v32_v13 = vsub.f32 %v14_v0, %v30_v12 }
  0x7b   :  { %v34_v14 = vmul.f32 %v32_v13, %v32_v13 }
  0x7d   :  { %v36_v15 = vsel %vm16_vm0, %v34_v14, 0.0 }
  0x7e   :  { %37 = vadd.xlane.f32.xlu1 %v36_v15  ;;  %v22_v16 = vpop.xlane.xlu0 %21 }
  0x7f   :  { %v31_v17 = vmul.f32 %v29_v10, %v22_v16 }
  0x81   :  { %v33_v18 = vsub.f32 %v15_v2, %v31_v17 }
  0x83   :  { %v35_v19 = vmul.f32 %v33_v18, %v33_v18 }
  0x85   :  { %v39_v20 = vsel %vm16_vm0, %v35_v19, 0.0 }
  0x86   :  { %40 = vadd.xlane.f32.xlu1 %v39_v20 }
  0xf1   :  { %v38_v21 = vpop.xlane.xlu1 %37 }
  0xf2   :  { %v42_v22 = vmul.f32 %v38_v21, %v29_v10 }
  0xf4   :  { %v44_v23 = vadd.f32 1e-05, %v42_v22 }
  0xf6   :  { %91 = vrsqrt.f32 %v44_v23  ;;  %vm52_vm3 = vweird.f32 %v44_v23 }
  0xf9   :  { %v41_v24 = vpop.xlane.xlu1 %40 }
  0xfa   :  { %v43_v25 = vmul.f32 %v41_v24, %v29_v10 }
  0xfc   :  { %v92_v26 = vpop.eup %91  ;;  %v45_v27 = vadd.f32 1e-05, %v43_v25 }
  0xfd   :  { %v47_v28 = vmul.f32 %v92_v26, %v44_v23  ;;  %vm53_vm2 = vweird.f32 %v92_v26 }
  0xfe   :  { %93 = vrsqrt.f32 %v45_v27  ;;  %vm54_vm4 = vmor %vm52_vm3, %vm53_vm2  ;;  %vm62_vm6 = vweird.f32 %v45_v27 }
  0xff   :  { %v48_v29 = vmul.f32 %v92_v26, %v47_v28 }
 0x101   :  { %v49_v30 = vmul.f32 0.5, %v48_v29 }
 0x103   :  { %v50_v31 = vsub.f32 1.5, %v49_v30 }
 0x104   :  { %v94_v32 = vpop.eup %93 }
 0x105   :  { %v51_v33 = vmul.f32 %v92_v26, %v50_v31  ;;  %v57_v34 = vmul.f32 %v94_v32, %v45_v27  ;;  %vm63_vm5 = vweird.f32 %v94_v32 }
 0x106   :  { %vm64_vm7 = vmor %vm62_vm6, %vm63_vm5 }
 0x107   :  { %v55_v36 = vsel %vm54_vm4, %v92_v26, %v51_v33  ;;  %v58_v37 = vmul.f32 %v94_v32, %v57_v34 }
 0x108   :  { %v66_v39 = vmul.f32 %v55_v36, %v32_v13 }
 0x109   :  { %v59_v40 = vmul.f32 0.5, %v58_v37 }
 0x10a   :  { %v72_v41 = vmul.f32 %v87_v35, %v66_v39 }
 0x10b   :  { %v60_v42 = vsub.f32 1.5, %v59_v40 }
 0x10c   :  { %v78_v43 = vadd.f32 %v88_v38, %v72_v41 }
 0x10d   :  { %v61_v44 = vmul.f32 %v94_v32, %v60_v42 }
 0x10e   :  { %80 = vst.msk [vmem:[%s143_s3] sm:$0xff] %vm16_vm0, %v78_v43 }
 0x10f   :  { %v65_v45 = vsel %vm64_vm7, %v94_v32, %v61_v44 }
 0x110   :  { %v67_v46 = vmul.f32 %v65_v45, %v33_v18 }
 0x112   :  { %v73_v47 = vmul.f32 %v87_v35, %v67_v46 }
 0x114   :  { %v79_v48 = vadd.f32 %v88_v38, %v73_v47 }
 0x116   :  { %81 = vst.msk [vmem:[%s143_s3 + $0x8] sm:$0xff] %vm16_vm0, %v79_v48 }

</bundles_post_ra>
